<compile_context>
chip_gen: v7x
topology: tpu7x:2x2x1
jax: 0.10.0
libtpu: 0.0.40
codegen_flags: <defaults>
</compile_context>

<pallas_src>
import math
import functools

import jax
import jax.numpy as jnp
from jax.experimental import pallas as pl
from jax.experimental.pallas import tpu as pltpu


def _layernorm(x, gamma, beta, eps=1e-5):
    # x: (TM, D) f32; gamma/beta: (1, D) — biased variance, like torch LayerNorm.
    mean = jnp.mean(x, axis=-1, keepdims=True)
    var = jnp.mean((x - mean) ** 2, axis=-1, keepdims=True)
    return (x - mean) * jax.lax.rsqrt(var + eps) * gamma + beta


def encoder_layer_kernel(
    # inputs
    xq_ref, xkv_ref,
    wq_ref, bq_ref, wk_ref, bk_ref, wv_ref, bv_ref, wo_ref, bo_ref,
    w1_ref, b1_ref, w2_ref, b2_ref,
    g1_ref, be1_ref, g2_ref, be2_ref,
    # outputs
    o_ref,
    # scratch
    k_scratch, v_scratch,
    *, n_heads: int, compute_dtype,
):
    TM, D = xq_ref.shape          # query tile (batch dim squeezed away by BlockSpec)
    S = xkv_ref.shape[0]          # full sequence length
    d_k = D // n_heads
    scale = 1.0 / math.sqrt(d_k)
    approx = compute_dtype != jnp.float32   # exact reciprocal on the f32 check path

    # ---- K/V projections for the whole sequence: once per batch element ----
    @pl.when(pl.program_id(1) == 0)
    def _():
        xs = xkv_ref[...].astype(compute_dtype)                      # (S, D)
        k = jnp.dot(xs, wk_ref[...], preferred_element_type=jnp.float32) + bk_ref[...]
        v = jnp.dot(xs, wv_ref[...], preferred_element_type=jnp.float32) + bv_ref[...]
        # (S, D) -> (H, S, d_k): heads on the leading axis for batched matmuls.
        k_scratch[...] = jnp.transpose(k.reshape(S, n_heads, d_k), (1, 0, 2)).astype(compute_dtype)
        v_scratch[...] = jnp.transpose(v.reshape(S, n_heads, d_k), (1, 0, 2)).astype(compute_dtype)

    x_res = xq_ref[...].astype(jnp.float32)   # residual path stays f32
    xc = x_res.astype(compute_dtype)

    # ---- Q projection (1/sqrt(d_k) folded into q: O(TM*d_k) VPU work) ----
    q = jnp.dot(xc, wq_ref[...], preferred_element_type=jnp.float32) + bq_ref[...]
    q = q * scale
    qh = jnp.transpose(q.reshape(TM, n_heads, d_k), (1, 0, 2)).astype(compute_dtype)  # (H, TM, d_k)

    # ---- batched multi-head attention (no per-head loop / concat) ----
    scores = jnp.einsum("hqd,hkd->hqk", qh, k_scratch[...],
                        preferred_element_type=jnp.float32)          # (H, TM, S)
    scores = scores - jnp.max(scores, axis=-1, keepdims=True)
    p = jnp.exp(scores)
    denom = jnp.sum(p, axis=-1, keepdims=True)
    p = p * pl.reciprocal(denom, approx=approx)                      # EUP, not VALU divide
    ctx = jnp.einsum("hqk,hkd->hqd", p.astype(compute_dtype), v_scratch[...],
                     preferred_element_type=jnp.float32)             # (H, TM, d_k)
    attn = jnp.transpose(ctx, (1, 0, 2)).reshape(TM, D)

    # ---- output projection ----
    attn = jnp.dot(attn.astype(compute_dtype), wo_ref[...],
                   preferred_element_type=jnp.float32) + bo_ref[...]

    # ---- residual + LayerNorm 1 (f32 stats) ----
    x1 = _layernorm(x_res + attn, g1_ref[...], be1_ref[...])

    # ---- position-wise feed-forward ----
    h1 = jnp.dot(x1.astype(compute_dtype), w1_ref[...],
                 preferred_element_type=jnp.float32) + b1_ref[...]
    h1 = jnp.maximum(h1, 0.0)
    ff = jnp.dot(h1.astype(compute_dtype), w2_ref[...],
                 preferred_element_type=jnp.float32) + b2_ref[...]

    # ---- residual + LayerNorm 2 ----
    o_ref[...] = _layernorm(x1 + ff, g2_ref[...], be2_ref[...]).astype(o_ref.dtype)


def encoder_layer_forward(x, params, n_heads, *, compute_dtype=jnp.bfloat16, q_tile=256):
    B, S, D = x.shape
    d_ff = params["w1"].shape[0]
    d_k = D // n_heads

    TM = min(q_tile, S)                      # query/token tile (256-multiple for real S)
    assert S % TM == 0, "sequence length must be divisible by the query tile"
    num_q_tiles = S // TM

    cd = compute_dtype
    # PyTorch stores Linear weights (out, in). Pre-transpose ONCE on the host to
    # (in, out) and cast to the MXU compute dtype: no in-kernel .T, half the
    # weight DMA bytes / resident VMEM when cd == bf16.
    wq = params["wq"].T.astype(cd)
    wk = params["wk"].T.astype(cd)
    wv = params["wv"].T.astype(cd)
    wo = params["wo"].T.astype(cd)
    w1 = params["w1"].T.astype(cd)           # (D, d_ff)
    w2 = params["w2"].T.astype(cd)           # (d_ff, D)

    def rep(shape):
        zeros = (0,) * len(shape)
        return pl.BlockSpec(shape, lambda b, i, _z=zeros: _z)

    in_specs = [
        pl.BlockSpec((None, TM, D), lambda b, i: (b, i, 0)),   # x: query tile (batch squeezed)
        pl.BlockSpec((None, S, D), lambda b, i: (b, 0, 0)),    # x: full sequence for K/V
        rep((D, D)), rep((1, D)),          # wq, bq
        rep((D, D)), rep((1, D)),          # wk, bk
        rep((D, D)), rep((1, D)),          # wv, bv
        rep((D, D)), rep((1, D)),          # wo, bo
        rep((D, d_ff)), rep((1, d_ff)),    # w1, b1
        rep((d_ff, D)), rep((1, D)),       # w2, b2
        rep((1, D)), rep((1, D)),          # gamma1, beta1
        rep((1, D)), rep((1, D)),          # gamma2, beta2
    ]

    kernel = functools.partial(encoder_layer_kernel, n_heads=n_heads, compute_dtype=cd)

    return pl.pallas_call(
        kernel,
        out_shape=jax.ShapeDtypeStruct((B, S, D), x.dtype),
        grid_spec=pltpu.PrefetchScalarGridSpec(
            num_scalar_prefetch=0,
            grid=(B, num_q_tiles),
            in_specs=in_specs,
            out_specs=pl.BlockSpec((None, TM, D), lambda b, i: (b, i, 0)),
            scratch_shapes=[
                pltpu.VMEM((n_heads, S, d_k), cd),   # K, laid out (H, S, d_k)
                pltpu.VMEM((n_heads, S, d_k), cd),   # V
            ],
        ),
        compiler_params=pltpu.CompilerParams(
            # batch parallel (megacore), seq-tile axis carries the K/V scratch -> arbitrary
            dimension_semantics=("parallel", "arbitrary"),
            # explicit budget: above v5e's 16 MiB scoped default, below v7x's 64 MiB physical
            vmem_limit_bytes=48 * 1024 * 1024,
        ),
    )(
        x, x,
        wq, params["bq"], wk, params["bk"], wv, params["bv"], wo, params["bo"],
        w1, params["b1"], w2, params["b2"],
        params["gamma1"], params["beta1"], params["gamma2"], params["beta2"],
    )


# ----------------------- pure-JAX reference -----------------------
def reference_forward(x, params, n_heads):
    B, S, D = x.shape
    d_k = D // n_heads

    def lin(v, w, b):
        return v @ w.T + b[0]

    q = lin(x, params["wq"], params["bq"]).reshape(B, S, n_heads, d_k).transpose(0, 2, 1, 3)
    k = lin(x, params["wk"], params["bk"]).reshape(B, S, n_heads, d_k).transpose(0, 2, 1, 3)
    v = lin(x, params["wv"], params["bv"]).reshape(B, S, n_heads, d_k).transpose(0, 2, 1, 3)
    scores = jnp.einsum("bhqd,bhkd->bhqk", q, k) / math.sqrt(d_k)
    p = jax.nn.softmax(scores, axis=-1)
    attn = jnp.einsum("bhqk,bhkd->bhqd", p, v).transpose(0, 2, 1, 3).reshape(B, S, D)
    attn = lin(attn, params["wo"], params["bo"])

    def ln(z, g, b, eps=1e-5):
        m = z.mean(-1, keepdims=True)
        var = ((z - m) ** 2).mean(-1, keepdims=True)
        return (z - m) / jnp.sqrt(var + eps) * g[0] + b[0]

    x1 = ln(x + attn, params["gamma1"], params["beta1"])
    ff = lin(jax.nn.relu(lin(x1, params["w1"], params["b1"])), params["w2"], params["b2"])
    return ln(x1 + ff, params["gamma2"], params["beta2"])


if __name__ == "__main__":
    B, S, D, H, FF = 2, 8, 32, 4, 64

    key = jax.random.PRNGKey(0)
    keys = jax.random.split(key, 16)

    def init(k, shape, scale=0.1):
        return jax.random.normal(k, shape, dtype=jnp.float32) * scale

    params = {
        "wq": init(keys[0], (D, D)), "bq": init(keys[1], (1, D)),
        "wk": init(keys[2], (D, D)), "bk": init(keys[3], (1, D)),
        "wv": init(keys[4], (D, D)), "bv": init(keys[5], (1, D)),
        "wo": init(keys[6], (D, D)), "bo": init(keys[7], (1, D)),
        "w1": init(keys[8], (FF, D)), "b1": init(keys[9], (1, FF)),
        "w2": init(keys[10], (D, FF)), "b2": init(keys[11], (1, D)),
        "gamma1": jnp.ones((1, D), jnp.float32), "beta1": jnp.zeros((1, D), jnp.float32),
        "gamma2": jnp.ones((1, D), jnp.float32), "beta2": jnp.zeros((1, D), jnp.float32),
    }

    x = jax.random.normal(keys[12], (B, S, D), dtype=jnp.float32)

    ref = reference_forward(x, params, H)

    # 1) f32 compute path: exact-math check against the reference.
    out_f32 = jax.block_until_ready(
        encoder_layer_forward(x, params, H, compute_dtype=jnp.float32))
    assert out_f32.shape == (B, S, D)
    assert jnp.allclose(out_f32, ref, atol=1e-4, rtol=1e-4), "f32 kernel mismatch vs reference"

    # 2) default bf16-MXU path: looser tolerance (bf16 matmuls + approx reciprocal).
    out_bf16 = jax.block_until_ready(
        encoder_layer_forward(x, params, H, compute_dtype=jnp.bfloat16))
    assert out_bf16.shape == (B, S, D)
    assert jnp.allclose(out_bf16, ref, atol=5e-2, rtol=5e-2), "bf16 kernel mismatch vs reference"

    print("KERNEL_OK")
</pallas_src>

<mosaic_0001>
module attributes {stable_mosaic.version = 11 : i64} {
  func.func @encoder_layer_kernel(%arg0: i32, %arg1: i32, %arg2: memref<1x8x32xf32, #tpu.memory_space<vmem>>, %arg3: memref<1x8x32xf32, #tpu.memory_space<vmem>>, %arg4: memref<32x32xf32, #tpu.memory_space<vmem>>, %arg5: memref<1x32xf32, #tpu.memory_space<vmem>>, %arg6: memref<32x32xf32, #tpu.memory_space<vmem>>, %arg7: memref<1x32xf32, #tpu.memory_space<vmem>>, %arg8: memref<32x32xf32, #tpu.memory_space<vmem>>, %arg9: memref<1x32xf32, #tpu.memory_space<vmem>>, %arg10: memref<32x32xf32, #tpu.memory_space<vmem>>, %arg11: memref<1x32xf32, #tpu.memory_space<vmem>>, %arg12: memref<32x64xf32, #tpu.memory_space<vmem>>, %arg13: memref<1x64xf32, #tpu.memory_space<vmem>>, %arg14: memref<64x32xf32, #tpu.memory_space<vmem>>, %arg15: memref<1x32xf32, #tpu.memory_space<vmem>>, %arg16: memref<1x32xf32, #tpu.memory_space<vmem>>, %arg17: memref<1x32xf32, #tpu.memory_space<vmem>>, %arg18: memref<1x32xf32, #tpu.memory_space<vmem>>, %arg19: memref<1x32xf32, #tpu.memory_space<vmem>>, %arg20: memref<1x8x32xf32, #tpu.memory_space<vmem>>, %arg21: memref<4x8x8xf32, #tpu.memory_space<vmem>>, %arg22: memref<4x8x8xf32, #tpu.memory_space<vmem>>) attributes {dimension_semantics = [#tpu.dimension_semantics<parallel>, #tpu.dimension_semantics<arbitrary>], iteration_bounds = array<i64: 2, 1>, scalar_prefetch = 0 : i64, scratch_operands = 2 : i64, tpu.core_type = #tpu.core_type<tc>, window_params = [{transform_indices = @transform_0, window_bounds = array<i64: 1, 8, 32>}, {transform_indices = @transform_1, window_bounds = array<i64: 1, 8, 32>}, {pipeline_mode = #tpu.pipeline_mode<synchronous>, transform_indices = @transform_2, window_bounds = array<i64: 32, 32>}, {pipeline_mode = #tpu.pipeline_mode<synchronous>, transform_indices = @transform_3, window_bounds = array<i64: 1, 32>}, {pipeline_mode = #tpu.pipeline_mode<synchronous>, transform_indices = @transform_4, window_bounds = array<i64: 32, 32>}, {pipeline_mode = #tpu.pipeline_mode<synchronous>, transform_indices = @transform_5, window_bounds = array<i64: 1, 32>}, {pipeline_mode = #tpu.pipeline_mode<synchronous>, transform_indices = @transform_6, window_bounds = array<i64: 32, 32>}, {pipeline_mode = #tpu.pipeline_mode<synchronous>, transform_indices = @transform_7, window_bounds = array<i64: 1, 32>}, {pipeline_mode = #tpu.pipeline_mode<synchronous>, transform_indices = @transform_8, window_bounds = array<i64: 32, 32>}, {pipeline_mode = #tpu.pipeline_mode<synchronous>, transform_indices = @transform_9, window_bounds = array<i64: 1, 32>}, {pipeline_mode = #tpu.pipeline_mode<synchronous>, transform_indices = @transform_10, window_bounds = array<i64: 32, 64>}, {pipeline_mode = #tpu.pipeline_mode<synchronous>, transform_indices = @transform_11, window_bounds = array<i64: 1, 64>}, {pipeline_mode = #tpu.pipeline_mode<synchronous>, transform_indices = @transform_12, window_bounds = array<i64: 64, 32>}, {pipeline_mode = #tpu.pipeline_mode<synchronous>, transform_indices = @transform_13, window_bounds = array<i64: 1, 32>}, {pipeline_mode = #tpu.pipeline_mode<synchronous>, transform_indices = @transform_14, window_bounds = array<i64: 1, 32>}, {pipeline_mode = #tpu.pipeline_mode<synchronous>, transform_indices = @transform_15, window_bounds = array<i64: 1, 32>}, {pipeline_mode = #tpu.pipeline_mode<synchronous>, transform_indices = @transform_16, window_bounds = array<i64: 1, 32>}, {pipeline_mode = #tpu.pipeline_mode<synchronous>, transform_indices = @transform_17, window_bounds = array<i64: 1, 32>}, {transform_indices = @transform_18, window_bounds = array<i64: 1, 8, 32>}]} {
    %c0_i32 = arith.constant 0 : i32
    %0 = arith.cmpi eq, %arg1, %c0_i32 : i32
    %1 = arith.extui %0 : i1 to i32
    %c0_i32_0 = arith.constant 0 : i32
    %2 = arith.cmpi ne, %1, %c0_i32_0 : i32
    scf.if %2 {
      %c0_55 = arith.constant 0 : index
      %c0_56 = arith.constant 0 : index
      %c0_57 = arith.constant 0 : index
      %100 = vector.load %arg3[%c0_55, %c0_56, %c0_57] : memref<1x8x32xf32, #tpu.memory_space<vmem>>, vector<1x8x32xf32>
      %101 = vector.shape_cast %100 : vector<1x8x32xf32> to vector<8x32xf32>
      %c0_58 = arith.constant 0 : index
      %c0_59 = arith.constant 0 : index
      %102 = vector.load %arg6[%c0_58, %c0_59] : memref<32x32xf32, #tpu.memory_space<vmem>>, vector<32x32xf32>
      %cst_60 = arith.constant dense<0.000000e+00> : vector<8x32xf32>
      %103 = tpu.matmul %101, %102, %cst_60 {dimension_numbers = #tpu.dot_dimension_numbers<[1], [0], [0], [1], [0, 0, 1, 1], [], []>} : vector<8x32xf32>, vector<32x32xf32>, vector<8x32xf32> -> vector<8x32xf32>
      %c0_61 = arith.constant 0 : index
      %c0_62 = arith.constant 0 : index
      %104 = vector.load %arg7[%c0_61, %c0_62] : memref<1x32xf32, #tpu.memory_space<vmem>>, vector<1x32xf32>
      %105 = vector.broadcast %104 : vector<1x32xf32> to vector<8x32xf32>
      %106 = arith.addf %103, %105 : vector<8x32xf32>
      %c0_63 = arith.constant 0 : index
      %c0_64 = arith.constant 0 : index
      %107 = vector.load %arg8[%c0_63, %c0_64] : memref<32x32xf32, #tpu.memory_space<vmem>>, vector<32x32xf32>
      %cst_65 = arith.constant dense<0.000000e+00> : vector<8x32xf32>
      %108 = tpu.matmul %101, %107, %cst_65 {dimension_numbers = #tpu.dot_dimension_numbers<[1], [0], [0], [1], [0, 0, 1, 1], [], []>} : vector<8x32xf32>, vector<32x32xf32>, vector<8x32xf32> -> vector<8x32xf32>
      %c0_66 = arith.constant 0 : index
      %c0_67 = arith.constant 0 : index
      %109 = vector.load %arg9[%c0_66, %c0_67] : memref<1x32xf32, #tpu.memory_space<vmem>>, vector<1x32xf32>
      %110 = vector.broadcast %109 : vector<1x32xf32> to vector<8x32xf32>
      %111 = arith.addf %108, %110 : vector<8x32xf32>
      %112 = vector.shape_cast %106 : vector<8x32xf32> to vector<8x4x8xf32>
      %113 = tpu.transpose %112, [1, 0, 2] : vector<8x4x8xf32> -> vector<4x8x8xf32>
      %c0_68 = arith.constant 0 : index
      %c0_69 = arith.constant 0 : index
      %c0_70 = arith.constant 0 : index
      %114 = vector.load %arg21[%c0_68, %c0_69, %c0_70] : memref<4x8x8xf32, #tpu.memory_space<vmem>>, vector<4x8x8xf32>
      tpu.vector_store %arg21[%c0_68, %c0_69, %c0_70], %113 {strides = array<i32>} : memref<4x8x8xf32, #tpu.memory_space<vmem>>, vector<4x8x8xf32>,
      %115 = vector.shape_cast %111 : vector<8x32xf32> to vector<8x4x8xf32>
      %116 = tpu.transpose %115, [1, 0, 2] : vector<8x4x8xf32> -> vector<4x8x8xf32>
      %c0_71 = arith.constant 0 : index
      %c0_72 = arith.constant 0 : index
      %c0_73 = arith.constant 0 : index
      %117 = vector.load %arg22[%c0_71, %c0_72, %c0_73] : memref<4x8x8xf32, #tpu.memory_space<vmem>>, vector<4x8x8xf32>
      tpu.vector_store %arg22[%c0_71, %c0_72, %c0_73], %116 {strides = array<i32>} : memref<4x8x8xf32, #tpu.memory_space<vmem>>, vector<4x8x8xf32>,
    } else {
    }
    %c0 = arith.constant 0 : index
    %c0_1 = arith.constant 0 : index
    %c0_2 = arith.constant 0 : index
    %3 = vector.load %arg2[%c0, %c0_1, %c0_2] : memref<1x8x32xf32, #tpu.memory_space<vmem>>, vector<1x8x32xf32>
    %4 = vector.shape_cast %3 : vector<1x8x32xf32> to vector<8x32xf32>
    %c0_3 = arith.constant 0 : index
    %c0_4 = arith.constant 0 : index
    %5 = vector.load %arg4[%c0_3, %c0_4] : memref<32x32xf32, #tpu.memory_space<vmem>>, vector<32x32xf32>
    %cst = arith.constant dense<0.000000e+00> : vector<8x32xf32>
    %6 = tpu.matmul %4, %5, %cst {dimension_numbers = #tpu.dot_dimension_numbers<[1], [0], [0], [1], [0, 0, 1, 1], [], []>} : vector<8x32xf32>, vector<32x32xf32>, vector<8x32xf32> -> vector<8x32xf32>
    %c0_5 = arith.constant 0 : index
    %c0_6 = arith.constant 0 : index
    %7 = vector.load %arg5[%c0_5, %c0_6] : memref<1x32xf32, #tpu.memory_space<vmem>>, vector<1x32xf32>
    %8 = vector.broadcast %7 : vector<1x32xf32> to vector<8x32xf32>
    %9 = arith.addf %6, %8 : vector<8x32xf32>
    %cst_7 = arith.constant 0.353553385 : f32
    %10 = vector.broadcast %cst_7 : f32 to vector<8x32xf32>
    %11 = arith.mulf %9, %10 : vector<8x32xf32>
    %12 = vector.shape_cast %11 : vector<8x32xf32> to vector<8x4x8xf32>
    %13 = tpu.transpose %12, [1, 0, 2] : vector<8x4x8xf32> -> vector<4x8x8xf32>
    %c0_8 = arith.constant 0 : index
    %c0_9 = arith.constant 0 : index
    %c0_10 = arith.constant 0 : index
    %14 = vector.load %arg21[%c0_8, %c0_9, %c0_10] : memref<4x8x8xf32, #tpu.memory_space<vmem>>, vector<4x8x8xf32>
    "tpu.trace_start"() <{level = 10 : i32, message = "hqd,hkd->hqk"}> : () -> ()
    %cst_11 = arith.constant dense<0.000000e+00> : vector<4x8x8xf32>
    %15 = tpu.matmul %13, %14, %cst_11 {dimension_numbers = #tpu.dot_dimension_numbers<[2], [2], [1], [1], [0, 0, 0, 1, 1, 1], [0], [0]>} : vector<4x8x8xf32>, vector<4x8x8xf32>, vector<4x8x8xf32> -> vector<4x8x8xf32>
    "tpu.trace_stop"() : () -> ()
    %cst_12 = arith.constant dense<0xFF800000> : vector<4x8xf32>
    %16 = vector.multi_reduction <maximumf>, %15, %cst_12 [2] : vector<4x8x8xf32> to vector<4x8xf32>
    %17 = vector.shape_cast %16 : vector<4x8xf32> to vector<4x8x1xf32>
    %18 = vector.broadcast %17 : vector<4x8x1xf32> to vector<4x8x8xf32>
    %19 = arith.subf %15, %18 : vector<4x8x8xf32>
    %20 = math.exp %19 : vector<4x8x8xf32>
    %cst_13 = arith.constant dense<0.000000e+00> : vector<4x8xf32>
    %21 = vector.multi_reduction <add>, %20, %cst_13 [2] : vector<4x8x8xf32> to vector<4x8xf32>
    %22 = vector.shape_cast %21 : vector<4x8xf32> to vector<4x8x1xf32>
    %23 = tpu.reciprocal %22 : vector<4x8x1xf32> -> vector<4x8x1xf32>
    %24 = vector.broadcast %23 : vector<4x8x1xf32> to vector<4x8x8xf32>
    %25 = arith.mulf %20, %24 : vector<4x8x8xf32>
    %c0_14 = arith.constant 0 : index
    %c0_15 = arith.constant 0 : index
    %c0_16 = arith.constant 0 : index
    %26 = vector.load %arg22[%c0_14, %c0_15, %c0_16] : memref<4x8x8xf32, #tpu.memory_space<vmem>>, vector<4x8x8xf32>
    "tpu.trace_start"() <{level = 10 : i32, message = "hqk,hkd->hqd"}> : () -> ()
    %cst_17 = arith.constant dense<0.000000e+00> : vector<4x8x8xf32>
    %27 = tpu.matmul %25, %26, %cst_17 {dimension_numbers = #tpu.dot_dimension_numbers<[2], [1], [1], [2], [0, 0, 0, 1, 1, 2], [0], [0]>} : vector<4x8x8xf32>, vector<4x8x8xf32>, vector<4x8x8xf32> -> vector<4x8x8xf32>
    "tpu.trace_stop"() : () -> ()
    %28 = tpu.transpose %27, [1, 0, 2] : vector<4x8x8xf32> -> vector<8x4x8xf32>
    %29 = vector.shape_cast %28 : vector<8x4x8xf32> to vector<8x32xf32>
    %c0_18 = arith.constant 0 : index
    %c0_19 = arith.constant 0 : index
    %30 = vector.load %arg10[%c0_18, %c0_19] : memref<32x32xf32, #tpu.memory_space<vmem>>, vector<32x32xf32>
    %cst_20 = arith.constant dense<0.000000e+00> : vector<8x32xf32>
    %31 = tpu.matmul %29, %30, %cst_20 {dimension_numbers = #tpu.dot_dimension_numbers<[1], [0], [0], [1], [0, 0, 1, 1], [], []>} : vector<8x32xf32>, vector<32x32xf32>, vector<8x32xf32> -> vector<8x32xf32>
    %c0_21 = arith.constant 0 : index
    %c0_22 = arith.constant 0 : index
    %32 = vector.load %arg11[%c0_21, %c0_22] : memref<1x32xf32, #tpu.memory_space<vmem>>, vector<1x32xf32>
    %33 = vector.broadcast %32 : vector<1x32xf32> to vector<8x32xf32>
    %34 = arith.addf %31, %33 : vector<8x32xf32>
    %35 = arith.addf %4, %34 : vector<8x32xf32>
    %c0_23 = arith.constant 0 : index
    %c0_24 = arith.constant 0 : index
    %36 = vector.load %arg16[%c0_23, %c0_24] : memref<1x32xf32, #tpu.memory_space<vmem>>, vector<1x32xf32>
    %c0_25 = arith.constant 0 : index
    %c0_26 = arith.constant 0 : index
    %37 = vector.load %arg17[%c0_25, %c0_26] : memref<1x32xf32, #tpu.memory_space<vmem>>, vector<1x32xf32>
    %cst_27 = arith.constant dense<0.000000e+00> : vector<8xf32>
    %38 = vector.multi_reduction <add>, %35, %cst_27 [1] : vector<8x32xf32> to vector<8xf32>
    %39 = vector.shape_cast %38 : vector<8xf32> to vector<8x1xf32>
    %cst_28 = arith.constant 3.200000e+01 : f32
    %40 = vector.broadcast %cst_28 : f32 to vector<8x1xf32>
    %41 = arith.divf %39, %40 : vector<8x1xf32>
    %42 = vector.broadcast %41 : vector<8x1xf32> to vector<8x32xf32>
    %43 = arith.subf %35, %42 : vector<8x32xf32>
    %44 = arith.mulf %43, %43 : vector<8x32xf32>
    %cst_29 = arith.constant dense<0.000000e+00> : vector<8xf32>
    %45 = vector.multi_reduction <add>, %44, %cst_29 [1] : vector<8x32xf32> to vector<8xf32>
    %46 = vector.shape_cast %45 : vector<8xf32> to vector<8x1xf32>
    %cst_30 = arith.constant 3.200000e+01 : f32
    %47 = vector.broadcast %cst_30 : f32 to vector<8x1xf32>
    %48 = arith.divf %46, %47 : vector<8x1xf32>
    %49 = vector.broadcast %41 : vector<8x1xf32> to vector<8x32xf32>
    %50 = arith.subf %35, %49 : vector<8x32xf32>
    %cst_31 = arith.constant 9.99999974E-6 : f32
    %51 = vector.broadcast %cst_31 : f32 to vector<8x1xf32>
    %52 = arith.addf %48, %51 : vector<8x1xf32>
    %53 = math.rsqrt %52 : vector<8x1xf32>
    %54 = vector.broadcast %53 : vector<8x1xf32> to vector<8x32xf32>
    %55 = arith.mulf %50, %54 : vector<8x32xf32>
    %56 = vector.broadcast %36 : vector<1x32xf32> to vector<8x32xf32>
    %57 = arith.mulf %55, %56 : vector<8x32xf32>
    %58 = vector.broadcast %37 : vector<1x32xf32> to vector<8x32xf32>
    %59 = arith.addf %57, %58 : vector<8x32xf32>
    %c0_32 = arith.constant 0 : index
    %c0_33 = arith.constant 0 : index
    %60 = vector.load %arg12[%c0_32, %c0_33] : memref<32x64xf32, #tpu.memory_space<vmem>>, vector<32x64xf32>
    %cst_34 = arith.constant dense<0.000000e+00> : vector<8x64xf32>
    %61 = tpu.matmul %59, %60, %cst_34 {dimension_numbers = #tpu.dot_dimension_numbers<[1], [0], [0], [1], [0, 0, 1, 1], [], []>} : vector<8x32xf32>, vector<32x64xf32>, vector<8x64xf32> -> vector<8x64xf32>
    %c0_35 = arith.constant 0 : index
    %c0_36 = arith.constant 0 : index
    %62 = vector.load %arg13[%c0_35, %c0_36] : memref<1x64xf32, #tpu.memory_space<vmem>>, vector<1x64xf32>
    %63 = vector.broadcast %62 : vector<1x64xf32> to vector<8x64xf32>
    %64 = arith.addf %61, %63 : vector<8x64xf32>
    %cst_37 = arith.constant 0.000000e+00 : f32
    %65 = vector.broadcast %cst_37 : f32 to vector<8x64xf32>
    %66 = arith.maximumf %64, %65 : vector<8x64xf32>
    %c0_38 = arith.constant 0 : index
    %c0_39 = arith.constant 0 : index
    %67 = vector.load %arg14[%c0_38, %c0_39] : memref<64x32xf32, #tpu.memory_space<vmem>>, vector<64x32xf32>
    %cst_40 = arith.constant dense<0.000000e+00> : vector<8x32xf32>
    %68 = tpu.matmul %66, %67, %cst_40 {dimension_numbers = #tpu.dot_dimension_numbers<[1], [0], [0], [1], [0, 0, 1, 1], [], []>} : vector<8x64xf32>, vector<64x32xf32>, vector<8x32xf32> -> vector<8x32xf32>
    %c0_41 = arith.constant 0 : index
    %c0_42 = arith.constant 0 : index
    %69 = vector.load %arg15[%c0_41, %c0_42] : memref<1x32xf32, #tpu.memory_space<vmem>>, vector<1x32xf32>
    %70 = vector.broadcast %69 : vector<1x32xf32> to vector<8x32xf32>
    %71 = arith.addf %68, %70 : vector<8x32xf32>
    %72 = arith.addf %59, %71 : vector<8x32xf32>
    %c0_43 = arith.constant 0 : index
    %c0_44 = arith.constant 0 : index
    %73 = vector.load %arg18[%c0_43, %c0_44] : memref<1x32xf32, #tpu.memory_space<vmem>>, vector<1x32xf32>
    %c0_45 = arith.constant 0 : index
    %c0_46 = arith.constant 0 : index
    %74 = vector.load %arg19[%c0_45, %c0_46] : memref<1x32xf32, #tpu.memory_space<vmem>>, vector<1x32xf32>
    %cst_47 = arith.constant dense<0.000000e+00> : vector<8xf32>
    %75 = vector.multi_reduction <add>, %72, %cst_47 [1] : vector<8x32xf32> to vector<8xf32>
    %76 = vector.shape_cast %75 : vector<8xf32> to vector<8x1xf32>
    %cst_48 = arith.constant 3.200000e+01 : f32
    %77 = vector.broadcast %cst_48 : f32 to vector<8x1xf32>
    %78 = arith.divf %76, %77 : vector<8x1xf32>
    %79 = vector.broadcast %78 : vector<8x1xf32> to vector<8x32xf32>
    %80 = arith.subf %72, %79 : vector<8x32xf32>
    %81 = arith.mulf %80, %80 : vector<8x32xf32>
    %cst_49 = arith.constant dense<0.000000e+00> : vector<8xf32>
    %82 = vector.multi_reduction <add>, %81, %cst_49 [1] : vector<8x32xf32> to vector<8xf32>
    %83 = vector.shape_cast %82 : vector<8xf32> to vector<8x1xf32>
    %cst_50 = arith.constant 3.200000e+01 : f32
    %84 = vector.broadcast %cst_50 : f32 to vector<8x1xf32>
    %85 = arith.divf %83, %84 : vector<8x1xf32>
    %86 = vector.broadcast %78 : vector<8x1xf32> to vector<8x32xf32>
    %87 = arith.subf %72, %86 : vector<8x32xf32>
    %cst_51 = arith.constant 9.99999974E-6 : f32
    %88 = vector.broadcast %cst_51 : f32 to vector<8x1xf32>
    %89 = arith.addf %85, %88 : vector<8x1xf32>
    %90 = math.rsqrt %89 : vector<8x1xf32>
    %91 = vector.broadcast %90 : vector<8x1xf32> to vector<8x32xf32>
    %92 = arith.mulf %87, %91 : vector<8x32xf32>
    %93 = vector.broadcast %73 : vector<1x32xf32> to vector<8x32xf32>
    %94 = arith.mulf %92, %93 : vector<8x32xf32>
    %95 = vector.broadcast %74 : vector<1x32xf32> to vector<8x32xf32>
    %96 = arith.addf %94, %95 : vector<8x32xf32>
    %c0_52 = arith.constant 0 : index
    %c0_53 = arith.constant 0 : index
    %c0_54 = arith.constant 0 : index
    %97 = vector.load %arg20[%c0_52, %c0_53, %c0_54] : memref<1x8x32xf32, #tpu.memory_space<vmem>>, vector<1x8x32xf32>
    %98 = vector.shape_cast %97 : vector<1x8x32xf32> to vector<8x32xf32>
    %99 = vector.shape_cast %96 : vector<8x32xf32> to vector<1x8x32xf32>
    tpu.vector_store %arg20[%c0_52, %c0_53, %c0_54], %99 {strides = array<i32>} : memref<1x8x32xf32, #tpu.memory_space<vmem>>, vector<1x8x32xf32>,
    return
  }
  func.func @transform_0(%arg0: i32, %arg1: i32) -> (i32, i32, i32) {
    %c0_i32 = arith.constant 0 : i32
    %c0_i32_0 = arith.constant 0 : i32
    return %arg0, %arg1, %c0_i32 : i32, i32, i32
  }
  func.func @transform_1(%arg0: i32, %arg1: i32) -> (i32, i32, i32) {
    %c0_i32 = arith.constant 0 : i32
    %c0_i32_0 = arith.constant 0 : i32
    %c0_i32_1 = arith.constant 0 : i32
    return %arg0, %c0_i32, %c0_i32_0 : i32, i32, i32
  }
  func.func @transform_2(%arg0: i32, %arg1: i32) -> (i32, i32) {
    %c0_i32 = arith.constant 0 : i32
    %c0_i32_0 = arith.constant 0 : i32
    %c0_i32_1 = arith.constant 0 : i32
    return %c0_i32, %c0_i32_0 : i32, i32
  }
  func.func @transform_3(%arg0: i32, %arg1: i32) -> (i32, i32) {
    %c0_i32 = arith.constant 0 : i32
    %c0_i32_0 = arith.constant 0 : i32
    %c0_i32_1 = arith.constant 0 : i32
    return %c0_i32, %c0_i32_0 : i32, i32
  }
  func.func @transform_4(%arg0: i32, %arg1: i32) -> (i32, i32) {
    %c0_i32 = arith.constant 0 : i32
    %c0_i32_0 = arith.constant 0 : i32
    %c0_i32_1 = arith.constant 0 : i32
    return %c0_i32, %c0_i32_0 : i32, i32
  }
  func.func @transform_5(%arg0: i32, %arg1: i32) -> (i32, i32) {
    %c0_i32 = arith.constant 0 : i32
    %c0_i32_0 = arith.constant 0 : i32
    %c0_i32_1 = arith.constant 0 : i32
    return %c0_i32, %c0_i32_0 : i32, i32
  }
  func.func @transform_6(%arg0: i32, %arg1: i32) -> (i32, i32) {
    %c0_i32 = arith.constant 0 : i32
    %c0_i32_0 = arith.constant 0 : i32
    %c0_i32_1 = arith.constant 0 : i32
    return %c0_i32, %c0_i32_0 : i32, i32
  }
  func.func @transform_7(%arg0: i32, %arg1: i32) -> (i32, i32) {
    %c0_i32 = arith.constant 0 : i32
    %c0_i32_0 = arith.constant 0 : i32
    %c0_i32_1 = arith.constant 0 : i32
    return %c0_i32, %c0_i32_0 : i32, i32
  }
  func.func @transform_8(%arg0: i32, %arg1: i32) -> (i32, i32) {
    %c0_i32 = arith.constant 0 : i32
    %c0_i32_0 = arith.constant 0 : i32
    %c0_i32_1 = arith.constant 0 : i32
    return %c0_i32, %c0_i32_0 : i32, i32
  }
  func.func @transform_9(%arg0: i32, %arg1: i32) -> (i32, i32) {
    %c0_i32 = arith.constant 0 : i32
    %c0_i32_0 = arith.constant 0 : i32
    %c0_i32_1 = arith.constant 0 : i32
    return %c0_i32, %c0_i32_0 : i32, i32
  }
  func.func @transform_10(%arg0: i32, %arg1: i32) -> (i32, i32) {
    %c0_i32 = arith.constant 0 : i32
    %c0_i32_0 = arith.constant 0 : i32
    %c0_i32_1 = arith.constant 0 : i32
    return %c0_i32, %c0_i32_0 : i32, i32
  }
  func.func @transform_11(%arg0: i32, %arg1: i32) -> (i32, i32) {
    %c0_i32 = arith.constant 0 : i32
    %c0_i32_0 = arith.constant 0 : i32
    %c0_i32_1 = arith.constant 0 : i32
    return %c0_i32, %c0_i32_0 : i32, i32
  }
  func.func @transform_12(%arg0: i32, %arg1: i32) -> (i32, i32) {
    %c0_i32 = arith.constant 0 : i32
    %c0_i32_0 = arith.constant 0 : i32
    %c0_i32_1 = arith.constant 0 : i32
    return %c0_i32, %c0_i32_0 : i32, i32
  }
  func.func @transform_13(%arg0: i32, %arg1: i32) -> (i32, i32) {
    %c0_i32 = arith.constant 0 : i32
    %c0_i32_0 = arith.constant 0 : i32
    %c0_i32_1 = arith.constant 0 : i32
    return %c0_i32, %c0_i32_0 : i32, i32
  }
  func.func @transform_14(%arg0: i32, %arg1: i32) -> (i32, i32) {
    %c0_i32 = arith.constant 0 : i32
    %c0_i32_0 = arith.constant 0 : i32
    %c0_i32_1 = arith.constant 0 : i32
    return %c0_i32, %c0_i32_0 : i32, i32
  }
  func.func @transform_15(%arg0: i32, %arg1: i32) -> (i32, i32) {
    %c0_i32 = arith.constant 0 : i32
    %c0_i32_0 = arith.constant 0 : i32
    %c0_i32_1 = arith.constant 0 : i32
    return %c0_i32, %c0_i32_0 : i32, i32
  }
  func.func @transform_16(%arg0: i32, %arg1: i32) -> (i32, i32) {
    %c0_i32 = arith.constant 0 : i32
    %c0_i32_0 = arith.constant 0 : i32
    %c0_i32_1 = arith.constant 0 : i32
    return %c0_i32, %c0_i32_0 : i32, i32
  }
  func.func @transform_17(%arg0: i32, %arg1: i32) -> (i32, i32) {
    %c0_i32 = arith.constant 0 : i32
    %c0_i32_0 = arith.constant 0 : i32
    %c0_i32_1 = arith.constant 0 : i32
    return %c0_i32, %c0_i32_0 : i32, i32
  }
  func.func @transform_18(%arg0: i32, %arg1: i32) -> (i32, i32, i32) {
    %c0_i32 = arith.constant 0 : i32
    %c0_i32_0 = arith.constant 0 : i32
    return %arg0, %arg1, %c0_i32 : i32, i32, i32
  }
}

</mosaic_0001>

<bundles_post_ra>
// kernel: tpu_custom_call.1
= control target key start
LH: loop header
LB: loop body
LE: loop exit
PB: predicated region body
PF: predicated region fallthrough
CT: control target
= control target key end

     0   :  { %s3903_s0 = inlined_call_operand.hbm [shape: f32[2,8,32], index: 0, kind: input, shape index: {}]   ;;  %s3904_s1 = inlined_call_operand.hbm [shape: f32[2,8,32], index: 1, kind: input, shape index: {}]   ;;  %s3905_s2 = inlined_call_operand.vmem [shape: f32[32,32], index: 2, kind: input, shape index: {}]   ;;  %s3906_s3 = inlined_call_operand.vmem [shape: f32[1,32], index: 3, kind: input, shape index: {}]   ;;  %s3907_s4 = inlined_call_operand.vmem [shape: f32[32,32], index: 4, kind: input, shape index: {}]   ;;  %s3908_s5 = inlined_call_operand.vmem [shape: f32[1,32], index: 5, kind: input, shape index: {}]   ;;  %s3909_s6 = inlined_call_operand.vmem [shape: f32[32,32], index: 6, kind: input, shape index: {}]   ;;  %s3910_s7 = inlined_call_operand.vmem [shape: f32[1,32], index: 7, kind: input, shape index: {}]   ;;  %s3911_s8 = inlined_call_operand.hbm [shape: f32[32,32], index: 8, kind: input, shape index: {}]   ;;  %s3912_s9 = inlined_call_operand.vmem [shape: f32[1,32], index: 9, kind: input, shape index: {}]   ;;  %s3913_s10 = inlined_call_operand.hbm [shape: f32[32,64], index: 10, kind: input, shape index: {}]   ;;  %s3914_s11 = inlined_call_operand.vmem [shape: f32[1,64], index: 11, kind: input, shape index: {}]   ;;  %s3915_s12 = inlined_call_operand.vmem [shape: f32[64,32], index: 12, kind: input, shape index: {}]   ;;  %s3916_s13 = inlined_call_operand.vmem [shape: f32[1,32], index: 13, kind: input, shape index: {}]   ;;  %s3917_s14 = inlined_call_operand.vmem [shape: f32[1,32], index: 14, kind: input, shape index: {}]   ;;  %s3918_s15 = inlined_call_operand.vmem [shape: f32[1,32], index: 15, kind: input, shape index: {}]   ;;  %s3919_s16 = inlined_call_operand.vmem [shape: f32[1,32], index: 16, kind: input, shape index: {}]   ;;  %s3920_s17 = inlined_call_operand.vmem [shape: f32[1,32], index: 17, kind: input, shape index: {}]   ;;  %s3921_s18 = inlined_call_operand.hbm [shape: f32[2,8,32], index: 18, kind: output, shape index: {}]  }
   0x1   :  { %3937 = sst [smem:[#allocation26_spill]] %s3903_s0 }
   0x2   :  { %3938 = sst [smem:[#allocation27_spill]] %s3904_s1 }
   0x3   :  { %3939 = sst [smem:[#allocation28_spill]] %s3905_s2 }
   0x4   :  { %3940 = sst [smem:[#allocation29_spill]] %s3911_s8 }
   0x5   :  { %3941 = sst [smem:[#allocation30_spill]] %s3913_s10 }
   0x6   :  { %3942 = sst [smem:[#allocation31_spill]] %s3914_s11 }
   0x7   :  { %3943 = sst [smem:[#allocation32_spill]] %s3916_s13 }
   0x8   :  { %3944 = sst [smem:[#allocation33_spill]] %s3918_s15 }
   0x9   :  { %3945 = sst [smem:[#allocation34_spill]] %s3919_s16 }
   0xa   :  { %3946 = sst [smem:[#allocation35_spill]] %s3920_s17 }
   0xb   :  { %3947 = sst [smem:[#allocation36_spill]] %s3921_s18 }
   0xc   :  { %23 = vsyncpa [#allocation5], 0 }
   0xd   :  { %25 = vsyncpa [#allocation5 + $0x1], 0 }
   0xe   :  { %26 = vsyncpa [#allocation8], 0 }
   0xf   :  { %28 = vsyncpa [#allocation8 + $0x1], 0 }
  0x10   :  { %29 = vsyncpa [#allocation11], 0 }
  0x11   :  { %30 = vsyncpa [#allocation6], 0 }
  0x12   :  { %32 = vsyncpa [#allocation6 + $0x1], 0  ;;  %s3346_s27 = smov 0   ;;  %s3348_s28 = smov 0  }
  0x13   :  { %s3350_s29 = smov 0   ;;  %s3352_s30 = smov 0  }
  0x14   :  { %s3354_s0 = smov 0   ;;  %s3356_s19 = smov 0  }
  0x15 LB: > { %3948 = sst [smem:[#allocation18_spill]] %s3211_s27  ;;  %s3377_s1 = sadd.s32 4294967295, %s3231_s19   ;;  %s3231_s19 = sphi %s3356_s19, %s38_s19   ;;  %s3227_s0 = sphi %s3354_s0, %s3991_s0   ;;  %s3223_s30 = sphi %s3352_s30, %s3990_s30   ;;  %s3219_s29 = sphi %s3350_s29, %s3989_s29   ;;  %s3215_s28 = sphi %s3348_s28, %s3993_s28   ;;  %s3211_s27 = sphi %s3346_s27, %s3992_s27  }
  0x16   : > { %3949 = sst [smem:[#allocation19_spill]] %s3219_s29  ;;  %s2639_s20 = sadd.s32 4294967294, %s3231_s19  }
  0x17   : > { %3950 = sst [smem:[#allocation20_spill]] %s3223_s30  ;;  %p72_p0 = scmp.ne.s32.totalorder %s3215_s28, %s3211_s27 }
  0x18   : > { %3951 = sst [smem:[#allocation21_spill]] %s3227_s0  ;;  %p3928_p1 = scmp.eq.s32.totalorder %s3377_s1, 0 }
  0x19   : > { %p466_p3 = scmp.eq.s32.totalorder %s2639_s20, 1  ;;  %p2640_p5 = scmp.ge.s32.totalorder %s3231_s19, 1 }
  0x1a   : > { %p3386_p4 = por %p3928_p1, %p72_p0  ;;  %p473_p7 = scmp.lt.s32.totalorder %s3231_s19, 3 }
  0x1b   : > { %p3391_p6 = por %p466_p3, %p72_p0  ;;  %s3233_s23 = smov [#allocation9]  }
  0x1c   : > { %s3952_s21 = scalar_select %p3386_p4, 1, 0 }
  0x1d   : > { %s3953_s22 = scalar_select %p3391_p6, 1, 0 }
  0x1e   : > { %p3396_p8 = pnand %p2640_p5, %p473_p7  ;;  %s503_s24 = sshll.u32 %s3233_s23, 4  ;;  %s3400_s24 = int_to_ptr.vmem [resolvable:$true] %s503_s24 }
  0x1f   : > { %3954 = sst [smem:[#allocation22_spill]] %s3953_s22  ;;  %s3234_s26 = smov [#allocation10]  }
  0x20   : > { %s3955_s2 = scalar_select %p3396_p8, 1, 0 }
  0x21   : > { %p2914_p9 = pneg %p3396_p8  ;;  %s519_s20 = sshll.u32 %s3234_s26, 4  ;;  %s3411_s20 = int_to_ptr.vmem [resolvable:$true] %s519_s20 }
  0x22   : > { %s3957_s8 = sld [smem:[#allocation29_spill]] }
  0x23   : > { %p3407_p11 = pnand %p2914_p9, %p3928_p1 }
  0x25   : > { %p3023_p13 = pneg %p3407_p11 }
  0x28   : > { %s3021_s23 = scalar_lea.hbm %s3957_s8, 512 }
  0x29   : > { %p3022_p12 = scmp.ne.s32.totalorder %s3957_s8, %s3021_s23  ;;  %p3028_p5 = scmp.lt.u32.totalorder %s3021_s23, %s3957_s8 }
  0x2b   : > { %p3024_p0 = pnand %p3023_p13, %p3022_p12 }
  0x2d   : > { %p3025_p3 = pneg %p3024_p0 }
  0x2f   : > { %p3030_p7 = pnand %p3028_p5, %p3025_p3 }
  0x31   : > { %3033 = shalt.err (!%p3030_p7)
}
  0x32   : > { %s3034_s27 = scalar_lea.vmem %s3400_s24, 512  ;;  %p3042_p2 = scmp.lt.s32.totalorder %s3400_s24, %s3400_s24 }
  0x33   : > { %p3035_p9 = scmp.ne.s32.totalorder %s3400_s24, %s3034_s27  ;;  %p3043_p12 = scmp.lt.s32.totalorder %s3034_s27, %s3034_s27 }
  0x35   : > { %p3037_p10 = pnand %p3035_p9, %p3023_p13  ;;  %p3044_p0 = por %p3043_p12, %p3042_p2 }
  0x37   : > { %p3038_p1 = pneg %p3037_p10 }
  0x39   : > { %p3045_p6 = pnand %p3044_p0, %p3038_p1 }
  0x3b   : > { %3048 = shalt.err (!%p3045_p6)
}
  0x3c   : > { %s3235_s16 = smov 128   ;;  %s3236_s17 = smov 8  }
  0x3d   : > { %2917 = dma.hbm_to_vmem [thread:$0]  (!%p3407_p11), %s3957_s8, 512, %s3400_s24, [#allocation8], %s3235_s16, %s3235_s16, %s3236_s17  }
  0x3e   : > { %s3958_s10 = sld [smem:[#allocation30_spill]] }
  0x44   : > { %s3049_s23 = scalar_lea.hbm %s3958_s10, 512 }
  0x45   : > { %p3050_p2 = scmp.ne.s32.totalorder %s3958_s10, %s3049_s23  ;;  %p3056_p10 = scmp.lt.u32.totalorder %s3049_s23, %s3958_s10 }
  0x47   : > { %p3052_p1 = pnand %p3050_p2, %p3023_p13 }
  0x49   : > { %p3053_p6 = pneg %p3052_p1 }
  0x4b   : > { %p3058_p3 = pnand %p3056_p10, %p3053_p6 }
  0x4d   : > { %3061 = shalt.err (!%p3058_p3)
}
  0x4e   : > { %s3062_s24 = scalar_lea.vmem %s3411_s20, 512  ;;  %p3070_p12 = scmp.lt.s32.totalorder %s3411_s20, %s3411_s20 }
  0x4f   : > { %p3063_p5 = scmp.ne.s32.totalorder %s3411_s20, %s3062_s24  ;;  %p3071_p0 = scmp.lt.s32.totalorder %s3062_s24, %s3062_s24 }
  0x51   : > { %p3065_p7 = pnand %p3063_p5, %p3023_p13  ;;  %p3072_p2 = por %p3071_p0, %p3070_p12 }
  0x53   : > { %p3066_p9 = pneg %p3065_p7 }
  0x55   : > { %p3073_p1 = pnand %p3072_p2, %p3066_p9 }
  0x57   : > { %3076 = shalt.err (!%p3073_p1)
}
  0x58   : > { %2920 = dma.hbm_to_vmem [thread:$0]  (!%p3407_p11), %s3958_s10, 512, %s3411_s20, [#allocation11], %s3235_s16, %s3235_s16, %s3236_s17  }
  0x59   : > { %s50_s15 = sadd.s32 1, %s3227_s0  ;;  %s59_s18 = sadd.s32 1, %s3219_s29 }
  0x5a   : > { %p52_p13 = scmp.ge.s32.totalorder %s50_s15, 2  ;;  %p66_p6 = scmp.ne.s32.totalorder %s3219_s29, %s3215_s28 }
  0x5b   : > { %p67_p10 = scmp.eq.s32.totalorder %s3231_s19, 0  ;;  %p2934_p3 = scmp.lt.s32.totalorder %s3231_s19, 2 }
  0x5c   : > { %s3995_s15 = smov (%p52_p13, %s50_s15), 0  ;;  %p3960_p7 = scmp.eq.s32.totalorder %s3377_s1, 1 }
  0x5d   : > { %3959 = sst [smem:[#allocation23_spill]] %s3995_s15  ;;  %p68_p5 = por %p67_p10, %p66_p6 }
  0x5e   : > { %p3475_p9 = por %p3960_p7, %p66_p6  ;;  %s54_s30 = ssub.s32 %s3227_s0, %s3995_s15 }
  0x5f   : > { %s554_s22 = sand.u32 1, %s3219_s29   ;;  %p57_p12 = scmp.eq.s32.totalorder %s54_s30, 0 }
  0x60   : > { %s3961_s25 = scalar_select %p3475_p9, 1, 0 }
  0x61   : > { %s3482_s20 = sshll.u32 %s554_s22, 3  ;;  %s2645_s16 = sshll.u32 %s3227_s0, 7 }
  0x62   : > { %3962 = sst [smem:[#allocation24_spill]] %s3961_s25  ;;  %s3964_s27 = sld [smem:[#allocation26_spill]] }
  0x63   : > { %s3486_s17 = scalar_select %p57_p12, %s3219_s29, %s59_s18  }
  0x64   : > { %s558_s13 = scalar_lea.vmem [#allocation4], %s3482_s20  ;;  %p3496_p11 = pnand %p2934_p3, %p68_p5 }
  0x65   : > { %3963 = sst [smem:[#allocation25_spill]] %s3486_s17  ;;  %s566_s8 = sshll.u32 %s558_s13, 4  ;;  %s3500_s8 = int_to_ptr.vmem [resolvable:$true] %s566_s8 }
  0x66   : > { %s3967_s26 = sld [smem:[#allocation27_spill]]  ;;  %p3079_p2 = pneg %p3496_p11 }
  0x68   : > { %s3965_s24 = smov %s3964_s27  ;;  %s3491_s11 = scalar_lea.hbm %s3964_s27, %s2645_s16 }
  0x69   : > { %s555_s27 = scalar_lea.sflag [#allocation5], %s554_s22  ;;  %s3077_s15 = scalar_lea.hbm %s3491_s11, 128 }
  0x6a   : > { %p3078_p0 = scmp.ne.s32.totalorder %s3491_s11, %s3077_s15  ;;  %s3082_s17 = scalar_lea.hbm %s3965_s24, 256 }
  0x6b   : > { %p3083_p6 = scmp.lt.u32.totalorder %s3491_s11, %s3965_s24  ;;  %p3084_p10 = scmp.lt.u32.totalorder %s3082_s17, %s3077_s15 }
  0x6c   : > { %s3505_s23 = scalar_lea.hbm %s3967_s26, %s2645_s16  ;;  %p3080_p1 = pnand %p3079_p2, %p3078_p0 }
  0x6d   : > { %p3085_p3 = por %p3084_p10, %p3083_p6  ;;  %p3086_p5 = scmp.lt.u32.totalorder %s3077_s15, %s3491_s11 }
  0x6e   : > { %p3081_p13 = pneg %p3080_p1 }
  0x6f   : > { %p3087_p7 = por %p3086_p5, %p3085_p3 }
  0x71   : > { %p3088_p12 = pnand %p3087_p7, %p3081_p13 }
  0x73   : > { %3091 = shalt.err (!%p3088_p12)
}
  0x74   : > { %s3092_s10 = scalar_lea.vmem %s3500_s8, 128  ;;  %s3237_s0 = smov [#allocation4]  }
  0x75   : > { %p3093_p0 = scmp.ne.s32.totalorder %s3500_s8, %s3092_s10  ;;  %s3097_s22 = sshll.u32 %s3237_s0, 4  ;;  %s3098_s22 = int_to_ptr.vmem [resolvable:$false] %s3097_s22 }
  0x76   : > { %s3099_s29 = scalar_lea.vmem %s3098_s22, 256  ;;  %p3100_p4 = scmp.lt.s32.totalorder %s3500_s8, %s3098_s22 }
  0x77   : > { %p3095_p1 = pnand %p3093_p0, %p3079_p2  ;;  %p3101_p6 = scmp.lt.s32.totalorder %s3099_s29, %s3092_s10 }
  0x79   : > { %p3096_p9 = pneg %p3095_p1  ;;  %p3102_p10 = por %p3101_p6, %p3100_p4 }
  0x7b   : > { %p3103_p3 = pnand %p3102_p10, %p3096_p9 }
  0x7d   : > { %3106 = shalt.err (!%p3103_p3)
}
  0x7e   : > { %2924 = dma.hbm_to_vmem [thread:$0]  (!%p3496_p11), %s3491_s11, 128, %s3500_s8, %s555_s27  }
  0x7f   : > { %s573_s15 = sand.u32 1, %s3231_s19   ;;  %s577_s25 = scalar_lea.vmem [#allocation7], %s3482_s20 }
  0x80   : > { %s584_s16 = sshll.u32 %s577_s25, 4  ;;  %s574_s17 = scalar_lea.sflag [#allocation8], %s573_s15  ;;  %s585_s16 = int_to_ptr.vmem [resolvable:$true] %s584_s16 }
  0x81   : > { %s3107_s18 = scalar_lea.hbm %s3505_s23, 128  ;;  %s3112_s0 = scalar_lea.hbm %s3967_s26, 256 }
  0x82   : > { %p3108_p4 = scmp.ne.s32.totalorder %s3505_s23, %s3107_s18  ;;  %p3113_p5 = scmp.lt.u32.totalorder %s3505_s23, %s3967_s26 }
  0x83   : > { %p3114_p7 = scmp.lt.u32.totalorder %s3112_s0, %s3107_s18  ;;  %p3116_p0 = scmp.lt.u32.totalorder %s3107_s18, %s3505_s23 }
  0x84   : > { %p3110_p9 = pnand %p3108_p4, %p3079_p2 }
  0x85   : > { %p3115_p12 = por %p3114_p7, %p3113_p5 }
  0x86   : > { %p3111_p13 = pneg %p3110_p9 }
  0x87   : > { %p3117_p1 = por %p3116_p0, %p3115_p12 }
  0x89   : > { %p3118_p6 = pnand %p3117_p1, %p3111_p13 }
  0x8b   : > { %3121 = shalt.err (!%p3118_p6)
}
  0x8c   : > { %s3122_s8 = scalar_lea.vmem %s585_s16, 128  ;;  %s3238_s20 = smov [#allocation7]  }
  0x8d   : > { %p3123_p10 = scmp.ne.s32.totalorder %s585_s16, %s3122_s8  ;;  %s3127_s11 = sshll.u32 %s3238_s20, 4  ;;  %s3128_s11 = int_to_ptr.vmem [resolvable:$false] %s3127_s11 }
  0x8e   : > { %s3129_s27 = scalar_lea.vmem %s3128_s11, 256  ;;  %p3130_p9 = scmp.lt.s32.totalorder %s585_s16, %s3128_s11 }
  0x8f   : > { %p3125_p3 = pnand %p3123_p10, %p3079_p2  ;;  %p3131_p8 = scmp.lt.s32.totalorder %s3129_s27, %s3122_s8 }
  0x91   : > { %p3126_p4 = pneg %p3125_p3  ;;  %p3132_p5 = por %p3131_p8, %p3130_p9 }
  0x93   : > { %p3133_p7 = pnand %p3132_p5, %p3126_p4 }
  0x95   : > { %3136 = shalt.err (!%p3133_p7)
}
  0x96   : > { %2927 = dma.hbm_to_vmem [thread:$0]  (!%p3496_p11), %s3505_s23, 128, %s585_s16, %s574_s17  }
  0x97   : > { %p3968_p13 = scmp.ne.s32.totalorder %s3955_s2, 0 }
  0x98   : > { %s3556_s15 = sand.u32 (!%p3968_p13), 1, %s3215_s28   ;;  %p3969_p8 = scmp.ne.s32.totalorder (!%p3968_p13), %s3952_s21, 0 }
  0x99   : > { %593 = sbr.rel (%p3968_p13) target bundleno = 2718 (0xa9e), region = 92  ;;  %s3559_s25 = sshll.u32 (!%p3968_p13), %s3556_s15, 3 }
  0x9a   : > { %s596_s18 = scalar_lea.sflag (!%p3968_p13), [#allocation5], %s3556_s15  ;;  %s599_s13 = scalar_lea.vmem (!%p3968_p13), [#allocation4], %s3559_s25 }
  0xa0   : > { %3190 = dma.done.wait (%p3969_p8), %s596_s18, 128  }
  0xa1   : > { %3192 = vsyncadd (%p3969_p8), %s596_s18, 4294967168  ;;  %s604_s2 = sand.u32 1, %s3377_s1   ;;  %s608_s23 = scalar_lea.vmem [#allocation7], %s3559_s25 }
  0xa2   : > { %s605_s30 = scalar_lea.sflag [#allocation8], %s604_s2 }
  0xa3   : > { %3194 = dma.done.wait (%p3969_p8), %s605_s30, 128  }
  0xa4   : > { %3196 = vsyncadd (%p3969_p8), %s605_s30, 4294967168  ;;  %p3970_p11 = scmp.eq.s32.totalorder %s3377_s1, 0 }
  0xa6   : > { %3198 = dma.done.wait (%p3970_p11), [#allocation8], 512   ;;  %p3971_p2 = pmov %p3970_p11 }
  0xa8   : > { %3200 = vsyncadd (%p3971_p2), [#allocation8], 4294966784  ;;  %p3972_p12 = pmov %p3971_p2 }
  0xa9   : > { %p3973_p0 = pmov %p3971_p2 }
  0xaa   : > { %3202 = dma.done.wait (%p3972_p12), [#allocation11], 512  }
  0xab   : > { %3204 = vsyncadd (%p3973_p0), [#allocation11], 4294966784  ;;  %v3239_v0 = vmov 0.0|0.0   ;;  %vm3240_vm0 = vmmov 0   ;;  %v3241_v1 = vmov 0.0   ;;  %v679_v2 = vld [vmem:[%s3907_s4] sm:$0xff]  ;;  %v860_v33 = vlaneseq }
  0xac   : > { %2858 = vmatprep.subr.bf16.mxu1 %v3239_v0  ;;  %2870 = vmatprep.subr.bf16.mxu0 %v3239_v0  ;;  %v680_v3 = vld [vmem:[%s3907_s4 + $0x8] sm:$0xff]  ;;  %s3974_s22 = sld [smem:[#allocation28_spill]]  ;;  %v681_v7 = vld [vmem:[%s3907_s4 + $0x10] sm:$0xff]  ;;  %v682_v8 = vld [vmem:[%s3907_s4 + $0x18] sm:$0xff]  ;;  %vm690_vm1 = vcmask 261120   ;;  %s3242_s10 = smov 104  }
  0xad   : > { %2752 = vmatprep.mubr.msk.f32.mxu1 %vm3240_vm0, %v3241_v1  ;;  %2774 = vmatprep.mubr.msk.f32.mxu0 %vm3240_vm0, %v3241_v1  ;;  %v2859_v5 = vpack.c.bf16 %v680_v3, %v679_v2  ;;  %v2862_v12 = vpack.c.bf16 %v682_v8, %v681_v7  ;;  %v678_v14 = vld [vmem:[%s608_s23] sm:$0xff]  ;;  %v3617_v15 = vld [vmem:[%s599_s13] sm:$0xff]  ;;  %s3243_s0 = smov 120   ;;  %s3244_s27 = smov 112   ;;  %v3245_v31 = vmov 1983009808  }
  0xae   : > { %v2654_v16 = vld [vmem:[%s3908_s5] ss:$0 sm:$0xff]  ;;  %v765_v26 = vld [vmem:[%s3909_s6 + $0x8] sm:$0xff]  ;;  %v766_v28 = vld [vmem:[%s3909_s6 + $0x10] sm:$0xff]  ;;  %v858_v32 = vunpack.c.l.s4 %v3245_v31  ;;  %v3246_v34 = vmov 1934713408  }
  0xaf   : > { %2860 = vmatpush3.bf16.msra.mxu1 %v2859_v5  ;;  %v2662_v17 = vld [vmem:[%s3906_s3] ss:$0 sm:$0xff]  ;;  %v767_v29 = vld [vmem:[%s3909_s6 + $0x18] sm:$0xff]  ;;  %v890_v35 = vunpack.c.l.s4 %v3246_v34  ;;  %v861_v37 = vshrl.u32 %v860_v33, 7  ;;  %vm991_vm2 = vcmask 64512   ;;  %s3247_s17 = smov 16  }
  0xb0   : > { %2861 = vmatprep.subr.bf16.mxu1 %v3239_v0  ;;  %v764_v25 = vld [vmem:[%s3909_s6] sm:$0xff]  ;;  %v2868_v30 = vpack.c.bf16 %v767_v29, %v766_v28  ;;  %v859_v36 = vunpack.c.0.s8 %v858_v32  ;;  %s3248_s13 = smov 8   ;;  %s3249_s1 = smov 24   ;;  %vm2177_vm3 = vcmask 130048   ;;  %vm2179_vm4 = vcmask 195584  }
  0xb1   : > { %v2865_v27 = vpack.c.bf16 %v765_v26, %v764_v25  ;;  %v891_v40 = vunpack.c.0.s8 %v890_v35  ;;  %s3975_s29 = sld [smem:[#allocation33_spill]]  ;;  %s3976_s30 = sld [smem:[#allocation31_spill]]  ;;  %vm2396_vm5 = vcmask 523264  }
  0xb2   : > { %v1147_v4 = vld [vmem:[%s3974_s22] sm:$0xff]  ;;  %v1148_v6 = vld [vmem:[%s3974_s22 + $0x8] sm:$0xff]  ;;  %v1149_v10 = vld [vmem:[%s3974_s22 + $0x10] sm:$0xff]  ;;  %v3657_v41 = vsub.s32 %v859_v36, %v861_v37  ;;  %s3977_s23 = sld [smem:[#allocation32_spill]]  ;;  %s3981_s20 = sld [smem:[#allocation35_spill]] }
  0xb3   : > { %v2871_v9 = vpack.c.bf16 %v1148_v6, %v1147_v4  ;;  %v1150_v11 = vld [vmem:[%s3974_s22 + $0x18] sm:$0xff]  ;;  %2863 = vmatpush3.bf16.msra.mxu1 %v2862_v12  ;;  %v3659_v48 = vsub.s32 %v891_v40, %v861_v37  ;;  %s3982_s21 = sld [smem:[#allocation36_spill]] }
  0xb4   : > { %v2874_v13 = vpack.c.bf16 %v1150_v11, %v1149_v10  ;;  %2864 = vmatprep.subr.bf16.mxu1 %v3239_v0 }
  0xb5   : > { %2872 = vmatpush3.bf16.msra.mxu0 %v2871_v9 }
  0xb6   : > { %2873 = vmatprep.subr.bf16.mxu0 %v3239_v0  ;;  %2753 = vmatmul.mubr.msk.f32.vlgmr.msra.gmra.mrb[0].mxu1 %vm690_vm1, %v678_v14 }
  0xb7   : > { %2763 = vmatprep.mubr.msk.f32.mxu1 %vm3240_vm0, %v3241_v1  ;;  %2866 = vmatpush3.bf16.msra.mxu1 %v2865_v27 }
  0xb8   : > { %2867 = vmatprep.subr.bf16.mxu1 %v3239_v0 }
  0xb9   : > { %2875 = vmatpush3.bf16.msra.mxu0 %v2874_v13 }
  0xba   : > { %2787 = vmatprep.subr.mxu0 %v3241_v1 }
  0xbb   : > { %2869 = vmatpush3.bf16.msra.mxu1 %v2868_v30 }
  0xbc   : > { %2775 = vmatmul.mubr.msk.f32.vlgmr.msra.gmra.mrb[0].mxu0 %vm690_vm1, %v3617_v15  ;;  %2777 = vmatprep.subr.mxu1 %v3241_v1 }
  0xbd   : > { %2789 = vmatprep.mubr.msk.f32.mxu0 %vm3240_vm0, %v3241_v1 }
  0xbe   : > { %2764 = vmatmul.mubr.msk.f32.vlgmr.msra.gmra.mrb[2].mxu1 %vm690_vm1, %v678_v14 }
  0xbf   : > { %2779 = vmatprep.mubr.msk.f32.mxu1 %vm3240_vm0, %v3241_v1 }
 0x189   : > { %v760_v18 = vpop.f32.mrb[0].mxu1 }
 0x18a   : > { %v761_v19 = vadd.f32 %v2654_v16, %v760_v18  ;;  %v2754_v20 = vpop.f32.mrb[1].mxu1 }
 0x18c   : > { %852 = vrot.lane.b32.xlu1 %v761_v19, %s3242_s10  ;;  %846 = vrot.lane.b32.xlu0 %v761_v19, %s3243_s0 }
 0x18f   : > { %v1228_v21 = vpop.f32.mrb[0].mxu0 }
 0x190   : > { %v1229_v22 = vadd.f32 %v2662_v17, %v1228_v21  ;;  %v2776_v23 = vpop.f32.mrb[1].mxu0  ;;  %849 = vrot.lane.b32.xlu0 %v761_v19, %s3244_s27 }
 0x192   : > { %v1232_v24 = vmul.f32 0.35355338, %v1229_v22 }
 0x194   : > { %1234 = vrot.lane.b32.xlu1 %v1232_v24, %s3243_s0  ;;  %1237 = vrot.lane.b32.xlu0 %v1232_v24, %s3244_s27 }
 0x198   : > { %1240 = vrot.lane.b32.xlu1 %v1232_v24, %s3242_s10 }
 0x1fe   : > { %v853_v38 = vpop.permute.xlu1 %852  ;;  %v847_v39 = vpop.permute.xlu0 %846 }
 0x1ff   : > { %v871_v42 = vcombine.low %v847_v39, %v853_v38  ;;  %v872_v43 = vcombine.high %v847_v39, %v853_v38 }
 0x201   : > { %v879_v49 = vrot.slane %v871_v42, %v3657_v41  ;;  %v886_v50 = vrot.slane %v872_v43, %v3657_v41 }
 0x202   : > { %v850_v45 = vpop.permute.xlu0 %849 }
 0x203   : > { %v855_v46 = vcombine.low %v761_v19, %v850_v45  ;;  %v856_v47 = vcombine.high %v761_v19, %v850_v45 }
 0x205   : > { %v863_v51 = vrot.slane %v855_v46, %v3657_v41  ;;  %v870_v52 = vrot.slane %v856_v47, %v3657_v41 }
 0x206   : > { %v1235_v44 = vpop.permute.xlu1 %1234  ;;  %v1238_v54 = vpop.permute.xlu0 %1237 }
 0x207   : > { %v887_v55 = vcombine.low %v863_v51, %v879_v49  ;;  %v888_v56 = vcombine.high %v863_v51, %v879_v49  ;;  %v903_v57 = vcombine.low %v870_v52, %v886_v50  ;;  %v904_v58 = vcombine.high %v870_v52, %v886_v50 }
 0x208   : > { %v1243_v61 = vcombine.low %v1232_v24, %v1238_v54  ;;  %v1244_v62 = vcombine.high %v1232_v24, %v1238_v54 }
 0x209   : > { %v895_v63 = vrot.slane %v887_v55, %v3659_v48  ;;  %v902_v2 = vrot.slane %v888_v56, %v3659_v48  ;;  %v911_v3 = vrot.slane %v903_v57, %v3659_v48  ;;  %v918_v4 = vrot.slane %v904_v58, %v3659_v48 }
 0x20a   : > { %v1241_v53 = vpop.permute.xlu1 %1240  ;;  %v1251_v7 = vrot.slane %v1243_v61, %v3657_v41  ;;  %v1258_v8 = vrot.slane %v1244_v62, %v3657_v41 }
 0x20b   : > { %v1259_v59 = vcombine.low %v1235_v44, %v1241_v53  ;;  %v1260_v60 = vcombine.high %v1235_v44, %v1241_v53  ;;  %v923_v9 = vcombine.low %v895_v63, %v902_v2  ;;  %v2658_v10 = vcombine.high %v895_v63, %v902_v2  ;;  %v841_v2 = vpop.f32.mrb[2].mxu1 }
 0x20c   : > { %v939_v11 = vcombine.low %v911_v3, %v918_v4  ;;  %v2659_v12 = vcombine.high %v911_v3, %v918_v4  ;;  %v2765_v3 = vpop.f32.mrb[3].mxu1 }
 0x20d   : > { %v1267_v5 = vrot.slane %v1259_v59, %v3657_v41  ;;  %v1274_v6 = vrot.slane %v1260_v60, %v3657_v41  ;;  %v930_v18 = vrot.slane %v923_v9, %v3657_v41  ;;  %v938_v19 = vrot.slane %v2658_v10, %v3657_v41 }
 0x20e   : > { %v946_v20 = vrot.slane %v939_v11, %v3657_v41  ;;  %v954_v21 = vrot.slane %v2659_v12, %v3657_v41 }
 0x20f   : > { %v1275_v13 = vcombine.low %v1251_v7, %v1267_v5  ;;  %v1276_v14 = vcombine.high %v1251_v7, %v1267_v5  ;;  %v1291_v16 = vcombine.low %v1258_v8, %v1274_v6  ;;  %v1292_v17 = vcombine.high %v1258_v8, %v1274_v6 }
 0x210   : > { %v955_v26 = vcombine.low %v930_v18, %v938_v19  ;;  %v956_v27 = vcombine.high %v930_v18, %v938_v19  ;;  %v971_v28 = vcombine.low %v946_v20, %v954_v21  ;;  %v972_v29 = vcombine.high %v946_v20, %v954_v21 }
 0x211   : > { %v1283_v22 = vrot.slane %v1275_v13, %v3659_v48  ;;  %v1290_v23 = vrot.slane %v1276_v14, %v3659_v48  ;;  %v1299_v24 = vrot.slane %v1291_v16, %v3659_v48  ;;  %v1306_v25 = vrot.slane %v1292_v17, %v3659_v48  ;;  %v2656_v17 = vld [vmem:[%s3910_s7] ss:$0 sm:$0xff] }
 0x212   : > { %v963_v34 = vrot.slane %v955_v26, %v3659_v48  ;;  %v970_v35 = vrot.slane %v956_v27, %v3659_v48  ;;  %v979_v36 = vrot.slane %v971_v28, %v3659_v48  ;;  %v986_v37 = vrot.slane %v972_v29, %v3659_v48 }
 0x213   : > { %v1311_v30 = vcombine.low %v1283_v22, %v1290_v23  ;;  %v2664_v31 = vcombine.high %v1283_v22, %v1290_v23  ;;  %v1327_v32 = vcombine.low %v1299_v24, %v1306_v25  ;;  %v2665_v33 = vcombine.high %v1299_v24, %v1306_v25 }
 0x214   : > { %v987_v43 = vcombine.low %v963_v34, %v979_v36  ;;  %v988_v44 = vcombine.high %v963_v34, %v979_v36  ;;  %v989_v45 = vcombine.low %v970_v35, %v986_v37  ;;  %v990_v46 = vcombine.high %v970_v35, %v986_v37 }
 0x215   : > { %v1318_v38 = vrot.slane %v1311_v30, %v3657_v41  ;;  %v1326_v39 = vrot.slane %v2664_v31, %v3657_v41  ;;  %v1334_v40 = vrot.slane %v1327_v32, %v3657_v41  ;;  %v1342_v42 = vrot.slane %v2665_v33, %v3657_v41 }
 0x216   : > { %992 = vst.msk [vmem:[#allocation2] sm:$0xff] %vm991_vm2, %v987_v43  ;;  %993 = vst.msk [vmem:[#allocation2 + $0x8] sm:$0xff] %vm991_vm2, %v988_v44  ;;  %v842_v18 = vadd.f32 %v2656_v17, %v841_v2 }
 0x217   : > { %994 = vst.msk [vmem:[#allocation2 + $0x10] sm:$0xff] %vm991_vm2, %v989_v45  ;;  %995 = vst.msk [vmem:[#allocation2 + $0x18] sm:$0xff] %vm991_vm2, %v990_v46  ;;  %v1343_v47 = vcombine.low %v1318_v38, %v1326_v39  ;;  %v1344_v49 = vcombine.high %v1318_v38, %v1326_v39  ;;  %v1359_v50 = vcombine.low %v1334_v40, %v1342_v42 }
 0x218   : > { %v1360_v51 = vcombine.high %v1334_v40, %v1342_v42 }
 0x219   : > { %v1351_v52 = vrot.slane %v1343_v47, %v3659_v48  ;;  %v1367_v53 = vrot.slane %v1359_v50, %v3659_v48  ;;  %v1358_v54 = vrot.slane %v1344_v49, %v3659_v48 }
 0x21a   : > { %v1374_v55 = vrot.slane %v1360_v51, %v3659_v48 }
 0x21b   : > { %v1375_v58 = vcombine.low %v1351_v52, %v1367_v53  ;;  %v1376_v61 = vcombine.high %v1351_v52, %v1367_v53 }
 0x21c   : > { %v1377_v59 = vcombine.low %v1358_v54, %v1374_v55  ;;  %v1378_v63 = vcombine.high %v1358_v54, %v1374_v55 }
 0x21d   : > { %v1379_v56 = vld [vmem:[#allocation2] sm:$0xff]  ;;  %v1380_v60 = vld [vmem:[#allocation2 + $0x8] sm:$0xff] }
 0x21e   : > { %v1381_v57 = vld [vmem:[#allocation2 + $0x10] sm:$0xff]  ;;  %2778 = vmatpush3.xpose.msk.msra.mxu1 %vm991_vm2, %v1379_v56  ;;  %v1382_v62 = vld [vmem:[#allocation2 + $0x18] sm:$0xff] }
 0x21f   : > { %2788 = vmatpush3.xpose.msk.msra.mxu0 %vm991_vm2, %v1381_v57  ;;  %2782 = vmatprep.subr.mxu1 %v3241_v1 }
 0x220   : > { %2797 = vmatprep.subr.mxu0 %v3241_v1 }
 0x221   : > { %2780 = vmatmul.mubr.msk.f32.vlgmr.msra.gmra.mrb[4].mxu1 %vm991_vm2, %v1375_v58 }
 0x222   : > { %2790 = vmatmul.mubr.msk.f32.vlgmr.msra.gmra.mrb[2].mxu0 %vm991_vm2, %v1377_v59  ;;  %2783 = vmatpush3.xpose.msk.msra.mxu1 %vm991_vm2, %v1380_v60 }
 0x223   : > { %2784 = vmatprep.mubr.msk.f32.mxu1 %vm3240_vm0, %v3241_v1  ;;  %2792 = vmatprep.subr.mxu1 %v3241_v1 }
 0x224   : > { %2799 = vmatprep.mubr.msk.f32.mxu0 %vm3240_vm0, %v3241_v1 }
 0x225   : > { %2785 = vmatmul.mubr.msk.f32.vlgmr.msra.gmra.mrb[6].mxu1 %vm991_vm2, %v1376_v61 }
 0x226   : > { %2793 = vmatpush3.xpose.msk.msra.mxu1 %vm991_vm2, %v1382_v62  ;;  %2794 = vmatprep.mubr.msk.f32.mxu1 %vm3240_vm0, %v3241_v1 }
 0x227   : > { %2802 = vmatprep.subr.mxu1 %v3241_v1 }
 0x229   : > { %2795 = vmatmul.mubr.msk.f32.vlgmr.msra.gmra.mrb[8].mxu1 %vm991_vm2, %v1378_v63 }
 0x22a   : > { %2804 = vmatprep.mubr.msk.f32.mxu1 %vm3240_vm0, %v3241_v1 }
 0x2f4   : > { %v1456_v4 = vpop.f32.mrb[4].mxu1 }
 0x2f5   : > { %v1608_v5 = vpop.f32.mrb[2].mxu0  ;;  %v2781_v6 = vpop.f32.mrb[5].mxu1  ;;  %v1688_v8 = vsel %vm991_vm2, %v1456_v4, -inf }
 0x2f6   : > { %v2791_v7 = vpop.f32.mrb[3].mxu0  ;;  %1689 = vmax.xlane.f32.xlu0 %v1688_v8  ;;  %v1694_v11 = vsel %vm991_vm2, %v1608_v5, -inf }
 0x2f8   : > { %v1532_v9 = vpop.f32.mrb[6].mxu1 }
 0x2f9   : > { %v2786_v10 = vpop.f32.mrb[7].mxu1  ;;  %v1691_v12 = vsel %vm991_vm2, %v1532_v9, -inf }
 0x2fa   : > { %1695 = vmax.xlane.f32.xlu0 %v1694_v11  ;;  %1692 = vmax.xlane.f32.xlu1 %v1691_v12 }
 0x2fc   : > { %v1684_v13 = vpop.f32.mrb[8].mxu1 }
 0x2fd   : > { %v2796_v14 = vpop.f32.mrb[9].mxu1  ;;  %v1697_v16 = vsel %vm991_vm2, %v1684_v13, -inf }
 0x2fe   : > { %1698 = vmax.xlane.f32.xlu0 %v1697_v16 }
 0x30b   : > { %997 = vrot.lane.b32.xlu1 %v842_v18, %s3243_s0  ;;  %s3980_s0 = sld [smem:[#allocation34_spill]] }
 0x30f   : > { %1003 = vrot.lane.b32.xlu1 %v842_v18, %s3242_s10 }
 0x314   : > { %1000 = vrot.lane.b32.xlu0 %v842_v18, %s3244_s27  ;;  %s673_s27 = scalar_lea.vmem [#allocation12], %s3559_s25  ;;  %s3250_s25 = smov [#allocation12]  }
 0x315   : > { %s2516_s18 = sshll.u32 %s673_s27, 4  ;;  %s3855_s18 = int_to_ptr.vmem [resolvable:$true] %s2516_s18 }
 0x383   : > { %v1690_v19 = vpop.xlane.xlu0 %1689 }
 0x384   : > { %v1700_v20 = vsub.f32 %v1456_v4, %v1690_v19 }
 0x386   : > { %v1704_v21 = vmul.f32 1.442695, %v1700_v20 }
 0x387   : > { %v1696_v22 = vpop.xlane.xlu0 %1695  ;;  %v1693_v23 = vpop.xlane.xlu1 %1692 }
 0x388   : > { %3001 = vpow2.f32 %v1704_v21  ;;  %v1702_v24 = vsub.f32 %v1608_v5, %v1696_v22  ;;  %v1701_v25 = vsub.f32 %v1532_v9, %v1693_v23 }
 0x38a   : > { %v1706_v26 = vmul.f32 1.442695, %v1701_v25  ;;  %v1708_v27 = vmul.f32 1.442695, %v1702_v24 }
 0x38b   : > { %v998_v28 = vpop.permute.xlu1 %997  ;;  %v1699_v29 = vpop.xlane.xlu0 %1698 }
 0x38c   : > { %v1703_v30 = vsub.f32 %v1684_v13, %v1699_v29  ;;  %3003 = vpow2.f32 %v1706_v26 }
 0x38d   : > { %3005 = vpow2.f32 %v1708_v27 }
 0x38e   : > { %v1710_v31 = vmul.f32 1.442695, %v1703_v30 }
 0x38f   : > { %v1004_v32 = vpop.permute.xlu1 %1003  ;;  %v1001_v33 = vpop.permute.xlu0 %1000 }
 0x390   : > { %3007 = vpow2.f32 %v1710_v31  ;;  %v1022_v34 = vcombine.low %v998_v28, %v1004_v32  ;;  %v1023_v35 = vcombine.high %v998_v28, %v1004_v32  ;;  %v1006_v36 = vcombine.low %v842_v18, %v1001_v33 }
 0x391   : > { %v1007_v37 = vcombine.high %v842_v18, %v1001_v33 }
 0x392   : > { %v3727_v38 = vpop.eup %3001  ;;  %v1030_v39 = vrot.slane %v1022_v34, %v3657_v41  ;;  %v1037_v40 = vrot.slane %v1023_v35, %v3657_v41  ;;  %v1014_v42 = vrot.slane %v1006_v36, %v3657_v41  ;;  %v2181_v35 = vld [vmem:[#allocation9] sm:$0xff]  ;;  %v2182_v36 = vld [vmem:[#allocation9 + $0x8] sm:$0xff] }
 0x393   : > { %v1021_v43 = vrot.slane %v1007_v37, %v3657_v41  ;;  %v1712_v44 = vsel %vm991_vm2, %v3727_v38, 0.0  ;;  %v2877_v37 = vpack.c.bf16 %v2182_v36, %v2181_v35 }
 0x394   : > { %v1038_v45 = vcombine.low %v1014_v42, %v1030_v39  ;;  %v1039_v46 = vcombine.high %v1014_v42, %v1030_v39  ;;  %1713 = vadd.xlane.f32.xlu1 %v1712_v44 }
 0x395   : > { %v1054_v47 = vcombine.low %v1021_v43, %v1037_v40  ;;  %v1055_v49 = vcombine.high %v1021_v43, %v1037_v40 }
 0x396   : > { %v1046_v50 = vrot.slane %v1038_v45, %v3659_v48  ;;  %v1053_v51 = vrot.slane %v1039_v46, %v3659_v48  ;;  %v3004_v52 = vpop.eup %3003 }
 0x397   : > { %v1062_v53 = vrot.slane %v1054_v47, %v3659_v48  ;;  %v1069_v54 = vrot.slane %v1055_v49, %v3659_v48  ;;  %v1715_v57 = vsel %vm991_vm2, %v3004_v52, 0.0  ;;  %v3006_v58 = vpop.eup %3005 }
 0x398   : > { %v1074_v55 = vcombine.low %v1046_v50, %v1053_v51  ;;  %v2660_v56 = vcombine.high %v1046_v50, %v1053_v51  ;;  %1716 = vadd.xlane.f32.xlu0 %v1715_v57  ;;  %v1718_v7 = vsel %vm991_vm2, %v3006_v58, 0.0 }
 0x399   : > { %v1090_v59 = vcombine.low %v1062_v53, %v1069_v54  ;;  %v2661_v60 = vcombine.high %v1062_v53, %v1069_v54 }
 0x39a   : > { %v3008_v61 = vpop.eup %3007  ;;  %v1081_v62 = vrot.slane %v1074_v55, %v3657_v41  ;;  %v1089_v63 = vrot.slane %v2660_v56, %v3657_v41 }
 0x39b   : > { %v1097_v2 = vrot.slane %v1090_v59, %v3657_v41  ;;  %v1105_v3 = vrot.slane %v2661_v60, %v3657_v41  ;;  %v1721_v4 = vsel %vm991_vm2, %v3008_v61, 0.0  ;;  %v2183_v60 = vld [vmem:[#allocation9 + $0x10] sm:$0xff] }
 0x39c   : > { %v1106_v5 = vcombine.low %v1081_v62, %v1089_v63  ;;  %v1107_v6 = vcombine.high %v1081_v62, %v1089_v63  ;;  %1722 = vadd.xlane.f32.xlu1 %v1721_v4  ;;  %1719 = vadd.xlane.f32.xlu0 %v1718_v7 }
 0x39d   : > { %v1122_v8 = vcombine.low %v1097_v2, %v1105_v3  ;;  %v1123_v9 = vcombine.high %v1097_v2, %v1105_v3 }
 0x39e   : > { %v1114_v10 = vrot.slane %v1106_v5, %v3659_v48  ;;  %v1121_v11 = vrot.slane %v1107_v6, %v3659_v48 }
 0x39f   : > { %v1130_v12 = vrot.slane %v1122_v8, %v3659_v48  ;;  %v1137_v13 = vrot.slane %v1123_v9, %v3659_v48 }
 0x3a1   : > { %v1138_v14 = vcombine.low %v1114_v10, %v1130_v12  ;;  %v1139_v16 = vcombine.high %v1114_v10, %v1130_v12  ;;  %v1140_v17 = vcombine.low %v1121_v11, %v1137_v13  ;;  %v1141_v18 = vcombine.high %v1121_v11, %v1137_v13 }
 0x3a3   : > { %1142 = vst.msk [vmem:[#allocation3] sm:$0xff] %vm991_vm2, %v1138_v14  ;;  %1143 = vst.msk [vmem:[#allocation3 + $0x8] sm:$0xff] %vm991_vm2, %v1139_v16 }
 0x3a4   : > { %1144 = vst.msk [vmem:[#allocation3 + $0x10] sm:$0xff] %vm991_vm2, %v1140_v17  ;;  %1145 = vst.msk [vmem:[#allocation3 + $0x18] sm:$0xff] %vm991_vm2, %v1141_v18 }
 0x3aa   : > { %v1732_v19 = vld [vmem:[#allocation3] sm:$0xff]  ;;  %v1733_v20 = vld [vmem:[#allocation3 + $0x8] sm:$0xff] }
 0x3ab   : > { %2798 = vmatpush3.msra.mxu0 %v1732_v19  ;;  %2803 = vmatpush3.msra.mxu1 %v1733_v20  ;;  %v1734_v27 = vld [vmem:[#allocation3 + $0x10] sm:$0xff]  ;;  %v1735_v31 = vld [vmem:[#allocation3 + $0x18] sm:$0xff] }
 0x3ac   : > { %2807 = vmatprep.subr.mxu0 %v3241_v1  ;;  %2812 = vmatprep.subr.mxu1 %v3241_v1 }
 0x421   : > { %v1714_v21 = vpop.xlane.xlu1 %1713 }
 0x422   : > { %3009 = vrcp.f32 %v1714_v21 }
 0x425   : > { %v1717_v22 = vpop.xlane.xlu0 %1716 }
 0x426   : > { %3011 = vrcp.f32 %v1717_v22 }
 0x429   : > { %v1723_v23 = vpop.xlane.xlu1 %1722  ;;  %v1720_v24 = vpop.xlane.xlu0 %1719 }
 0x42a   : > { %3013 = vrcp.f32 %v1723_v23 }
 0x42b   : > { %3015 = vrcp.f32 %v1720_v24 }
 0x42c   : > { %v3010_v25 = vpop.eup %3009 }
 0x42d   : > { %v1728_v26 = vmul.f32 %v3010_v25, %v3727_v38 }
 0x42f   : > { %2800 = vmatmul.mubr.msk.f32.vlgmr.msra.gmra.mrb[4].mxu0 %vm991_vm2, %v1728_v26 }
 0x430   : > { %2808 = vmatpush3.msra.mxu0 %v1734_v27  ;;  %2809 = vmatprep.mubr.msk.f32.mxu0 %vm3240_vm0, %v3241_v1  ;;  %v3012_v28 = vpop.eup %3011 }
 0x431   : > { %2876 = vmatprep.subr.bf16.mxu0 %v3239_v0  ;;  %v1729_v29 = vmul.f32 %v3012_v28, %v3004_v52 }
 0x433   : > { %2805 = vmatmul.mubr.msk.f32.vlgmr.msra.gmra.mrb[10].mxu1 %vm991_vm2, %v1729_v29 }
 0x434   : > { %v3014_v30 = vpop.eup %3013  ;;  %2813 = vmatpush3.msra.mxu1 %v1735_v31  ;;  %2814 = vmatprep.mubr.msk.f32.mxu1 %vm3240_vm0, %v3241_v1 }
 0x435   : > { %v3016_v32 = vpop.eup %3015  ;;  %v1731_v33 = vmul.f32 %v3014_v30, %v3008_v61  ;;  %2882 = vmatprep.subr.bf16.mxu1 %v3239_v0  ;;  %v2184_v61 = vld [vmem:[#allocation9 + $0x18] sm:$0xff] }
 0x436   : > { %v1730_v34 = vmul.f32 %v3016_v32, %v3006_v58  ;;  %v2880_v4 = vpack.c.bf16 %v2184_v61, %v2183_v60  ;;  %v2682_v60 = vld [vmem:[%s3917_s14] ss:$0 sm:$0xff] }
 0x437   : > { %2815 = vmatmul.mubr.msk.f32.vlgmr.msra.gmra.mrb[12].mxu1 %vm991_vm2, %v1731_v33 }
 0x438   : > { %2810 = vmatmul.mubr.msk.f32.vlgmr.msra.gmra.mrb[6].mxu0 %vm991_vm2, %v1730_v34  ;;  %2836 = vmatprep.mubr.msk.f32.mxu1 %vm3240_vm0, %v3241_v1 }
 0x439   : > { %2825 = vmatprep.mubr.msk.f32.mxu0 %vm3240_vm0, %v3241_v1  ;;  %2878 = vmatpush3.bf16.msra.mxu0 %v2877_v37 }
 0x43a   : > { %2879 = vmatprep.subr.bf16.mxu0 %v3239_v0 }
 0x43d   : > { %2881 = vmatpush3.bf16.msra.mxu0 %v2880_v4 }
 0x43e   : > { %2888 = vmatprep.subr.bf16.mxu0 %v3239_v0 }
 0x502   : > { %v1805_v38 = vpop.f32.mrb[4].mxu0 }
 0x503   : > { %v2801_v39 = vpop.f32.mrb[5].mxu0 }
 0x506   : > { %v1878_v40 = vpop.f32.mrb[10].mxu1 }
 0x507   : > { %v2806_v42 = vpop.f32.mrb[11].mxu1 }
 0x508   : > { %v2297_v42 = vld [vmem:[#allocation10 + $0x8] sm:$0xff] }
 0x50a   : > { %v2024_v44 = vpop.f32.mrb[12].mxu1 }
 0x50b   : > { %v1951_v43 = vpop.f32.mrb[6].mxu0  ;;  %v2044_v47 = vcombine.low %v1878_v40, %v2024_v44  ;;  %v2045_v49 = vcombine.high %v1878_v40, %v2024_v44  ;;  %v2816_v51 = vpop.f32.mrb[13].mxu1  ;;  %v2298_v44 = vld [vmem:[#allocation10 + $0x10] sm:$0xff] }
 0x50c   : > { %v2028_v45 = vcombine.low %v1805_v38, %v1951_v43  ;;  %v2029_v46 = vcombine.high %v1805_v38, %v1951_v43  ;;  %v2811_v50 = vpop.f32.mrb[7].mxu0  ;;  %v2384_v51 = vld [vmem:[%s3915_s12 + $0x18] sm:$0xff] }
 0x50d   : > { %v2052_v54 = vrot.slane %v2044_v47, %v3657_v41  ;;  %v2059_v55 = vrot.slane %v2045_v49, %v3657_v41  ;;  %v2382_v47 = vld [vmem:[%s3915_s12 + $0x8] sm:$0xff]  ;;  %v2383_v49 = vld [vmem:[%s3915_s12 + $0x10] sm:$0xff] }
 0x50e   : > { %v2036_v52 = vrot.slane %v2028_v45, %v3657_v41  ;;  %v2043_v53 = vrot.slane %v2029_v46, %v3657_v41  ;;  %v2299_v45 = vld [vmem:[#allocation10 + $0x18] sm:$0xff] }
 0x50f   : > { %v2886_v46 = vpack.c.bf16 %v2299_v45, %v2298_v44 }
 0x510   : > { %v2060_v56 = vcombine.low %v2036_v52, %v2052_v54  ;;  %v2061_v57 = vcombine.high %v2036_v52, %v2052_v54  ;;  %v2076_v58 = vcombine.low %v2043_v53, %v2059_v55  ;;  %v2077_v59 = vcombine.high %v2043_v53, %v2059_v55  ;;  %v2385_v53 = vld [vmem:[%s3915_s12 + $0x20] sm:$0xff]  ;;  %v2386_v54 = vld [vmem:[%s3915_s12 + $0x28] sm:$0xff] }
 0x511   : > { %v2892_v52 = vpack.c.bf16 %v2384_v51, %v2383_v49  ;;  %v2895_v55 = vpack.c.bf16 %v2386_v54, %v2385_v53 }
 0x512   : > { %v2068_v62 = vrot.slane %v2060_v56, %v3659_v48  ;;  %v2075_v63 = vrot.slane %v2061_v57, %v3659_v48  ;;  %v2084_v2 = vrot.slane %v2076_v58, %v3659_v48  ;;  %v2091_v3 = vrot.slane %v2077_v59, %v3659_v48 }
 0x514   : > { %v2096_v5 = vcombine.low %v2068_v62, %v2075_v63  ;;  %v2678_v6 = vcombine.high %v2068_v62, %v2075_v63  ;;  %v2112_v7 = vcombine.low %v2084_v2, %v2091_v3  ;;  %v2679_v8 = vcombine.high %v2084_v2, %v2091_v3  ;;  %v2683_v62 = vld [vmem:[%s3975_s29] ss:$0 sm:$0xff]  ;;  %v2388_v3 = vld [vmem:[%s3915_s12 + $0x38] sm:$0xff] }
 0x516   : > { %v2103_v9 = vrot.slane %v2096_v5, %v3657_v41  ;;  %v2111_v10 = vrot.slane %v2678_v6, %v3657_v41  ;;  %v2119_v11 = vrot.slane %v2112_v7, %v3657_v41  ;;  %v2127_v12 = vrot.slane %v2679_v8, %v3657_v41  ;;  %v2684_v5 = vld [vmem:[%s3976_s30] ss:$0 sm:$0xff] }
 0x518   : > { %v2129_v13 = vcombine.high %v2103_v9, %v2111_v10  ;;  %v2145_v14 = vcombine.high %v2119_v11, %v2127_v12  ;;  %v2128_v16 = vcombine.low %v2103_v9, %v2111_v10  ;;  %v2144_v17 = vcombine.low %v2119_v11, %v2127_v12  ;;  %v2686_v10 = vld [vmem:[%s3977_s23] ss:$0 sm:$0xff]  ;;  %s2502_s23 = scalar_lea.sflag [#allocation6], %s3556_s15 }
 0x51a   : > { %v2143_v18 = vrot.slane %v2129_v13, %v3659_v48  ;;  %v2159_v19 = vrot.slane %v2145_v14, %v3659_v48  ;;  %v2136_v20 = vrot.slane %v2128_v16, %v3659_v48  ;;  %v2152_v21 = vrot.slane %v2144_v17, %v3659_v48  ;;  %v2680_v48 = vld [vmem:[%s3912_s9] ss:$0 sm:$0xff] }
 0x51c   : > { %v2162_v22 = vcombine.low %v2143_v18, %v2159_v19  ;;  %v2161_v23 = vcombine.high %v2136_v20, %v2152_v21  ;;  %v2163_v24 = vcombine.high %v2143_v18, %v2159_v19  ;;  %v2160_v25 = vcombine.low %v2136_v20, %v2152_v21 }
 0x51e   : > { %2169 = vrot.lane.b32.xlu1 %v2162_v22, %s3247_s17  ;;  %2165 = vrot.lane.b32.xlu0 %v2161_v23, %s3248_s13  ;;  %s3978_s17 = sld [smem:[#allocation20_spill]]  ;;  %s3979_s13 = sld [smem:[#allocation24_spill]] }
 0x522   : > { %2173 = vrot.lane.b32.xlu1 %v2163_v24, %s3249_s1  ;;  %s3137_s1 = scalar_lea.vmem %s3855_s18, 128 }
 0x523   : > { %p3138_p1 = scmp.ne.s32.totalorder %s3855_s18, %s3137_s1 }
 0x524   : > { %s2691_s11 = sshll.u32 %s3978_s17, 7  ;;  %p3983_p6 = scmp.ne.s32.totalorder %s3979_s13, 0 }
 0x525   : > { %s3853_s16 = scalar_lea.hbm %s3982_s21, %s2691_s11  ;;  %s3141_s17 = sshll.u32 %s3250_s25, 4  ;;  %s3142_s17 = int_to_ptr.vmem [resolvable:$false] %s3141_s17 }
 0x526   : > { %p3139_p10 = pnand %p3138_p1, %p3983_p6  ;;  %s3143_s10 = scalar_lea.vmem %s3142_s17, 256 }
 0x527   : > { %p3144_p4 = scmp.lt.s32.totalorder %s3855_s18, %s3142_s17  ;;  %p3145_p9 = scmp.lt.s32.totalorder %s3143_s10, %s3137_s1 }
 0x528   : > { %p3140_p3 = pneg %p3139_p10 }
 0x529   : > { %p3146_p5 = por %p3145_p9, %p3144_p4 }
 0x52b   : > { %p3147_p7 = pnand %p3146_p5, %p3140_p3 }
 0x590   : > { %v2170_v41 = vpop.permute.xlu1 %2169  ;;  %v2166_v26 = vpop.permute.xlu0 %2165 }
 0x591   : > { %v2176_v27 = vsel %vm991_vm2, %v2160_v25, %v2166_v26 }
 0x592   : > { %v2178_v29 = vsel %vm2177_vm3, %v2176_v27, %v2170_v41  ;;  %v2688_v41 = vld [vmem:[%s3980_s0] ss:$0 sm:$0xff] }
 0x593   : > { %v2689_v27 = vld [vmem:[%s3981_s20] ss:$0 sm:$0xff] }
 0x594   : > { %v2174_v28 = vpop.permute.xlu1 %2173 }
 0x595   : > { %v2180_v30 = vsel %vm2179_vm4, %v2178_v29, %v2174_v28 }
 0x596   : > { %2826 = vmatmul.mubr.msk.f32.vlgmr.msra.gmra.mrb[8].mxu0 %vm690_vm1, %v2180_v30 }
 0x597   : > { %2855 = vmatprep.mubr.msk.f32.mxu0 %vm3240_vm0, %v3241_v1  ;;  %v2296_v1 = vld [vmem:[#allocation10] sm:$0xff] }
 0x598   : > { %v2883_v43 = vpack.c.bf16 %v2297_v42, %v2296_v1 }
 0x59a   : > { %2884 = vmatpush3.bf16.msra.mxu1 %v2883_v43 }
 0x59b   : > { %2885 = vmatprep.subr.bf16.mxu1 %v3239_v0 }
 0x59e   : > { %2887 = vmatpush3.bf16.msra.mxu1 %v2886_v46 }
 0x669   : > { %v2261_v31 = vpop.f32.mrb[8].mxu0 }
 0x66a   : > { %v2262_v32 = vadd.f32 %v2680_v48, %v2261_v31  ;;  %v2827_v33 = vpop.f32.mrb[9].mxu0 }
 0x66c   : > { %v2265_v34 = vadd.f32 %v2262_v32, %v3617_v15  ;;  %v2381_v15 = vld [vmem:[%s3915_s12] sm:$0xff] }
 0x66d   : > { %v2889_v50 = vpack.c.bf16 %v2382_v47, %v2381_v15 }
 0x66e   : > { %v2268_v35 = vsel %vm690_vm1, %v2265_v34, 0.0 }
 0x66f   : > { %2269 = vadd.xlane.f32.xlu0 %v2268_v35  ;;  %2890 = vmatpush3.bf16.msra.mxu0 %v2889_v50 }
 0x670   : > { %2891 = vmatprep.subr.bf16.mxu0 %v3239_v0 }
 0x673   : > { %2893 = vmatpush3.bf16.msra.mxu0 %v2892_v52 }
 0x674   : > { %2894 = vmatprep.subr.bf16.mxu0 %v3239_v0 }
 0x677   : > { %2896 = vmatpush3.bf16.msra.mxu0 %v2895_v55 }
 0x678   : > { %2897 = vmatprep.subr.bf16.mxu0 %v3239_v0  ;;  %v2387_v0 = vld [vmem:[%s3915_s12 + $0x30] sm:$0xff] }
 0x679   : > { %v2898_v4 = vpack.c.bf16 %v2388_v3, %v2387_v0 }
 0x67b   : > { %2899 = vmatpush3.bf16.msra.mxu0 %v2898_v4 }
 0x6fc   : > { %v2270_v36 = vpop.xlane.xlu0 %2269 }
 0x6fd   : > { %v2272_v37 = vmul.f32 0.03125, %v2270_v36 }
 0x6ff   : > { %v2273_v38 = vsub.f32 %v2265_v34, %v2272_v37 }
 0x701   : > { %v2274_v39 = vmul.f32 %v2273_v38, %v2273_v38 }
 0x703   : > { %v2275_v40 = vsel %vm690_vm1, %v2274_v39, 0.0 }
 0x704   : > { %2276 = vadd.xlane.f32.xlu1 %v2275_v40 }
 0x791   : > { %v2277_v56 = vpop.xlane.xlu1 %2276 }
 0x792   : > { %v2278_v57 = vmul.f32 0.03125, %v2277_v56 }
 0x794   : > { %v2279_v58 = vadd.f32 1e-05, %v2278_v57 }
 0x796   : > { %3017 = vrsqrt.f32 %v2279_v58 }
 0x7a0   : > { %v3018_v59 = vpop.eup %3017 }
 0x7a1   : > { %v2281_v61 = vmul.f32 %v3018_v59, %v2273_v38 }
 0x7a3   : > { %v2288_v63 = vmul.f32 %v2682_v60, %v2281_v61 }
 0x7a5   : > { %v2295_v2 = vadd.f32 %v2683_v62, %v2288_v63 }
 0x7a7   : > { %2837 = vmatmul.mubr.msk.f32.vlgmr.msra.gmra.mrb[14].mxu1 %vm690_vm1, %v2295_v2 }
 0x87a   : > { %v2376_v6 = vpop.f32.mrb[14].mxu1 }
 0x87b   : > { %v2377_v7 = vadd.f32 %v2684_v5, %v2376_v6  ;;  %v2838_v8 = vpop.f32.mrb[15].mxu1 }
 0x87d   : > { %v2380_v9 = vmax.f32 %v2377_v7, 0.0 }
 0x87f   : > { %2856 = vmatmul.mubr.msk.f32.vlgmr.msra.gmra.mrb[10].mxu0 %vm2396_vm5, %v2380_v9 }
 0x952   : > { %v2466_v11 = vpop.f32.mrb[10].mxu0 }
 0x953   : > { %v2467_v12 = vadd.f32 %v2686_v10, %v2466_v11  ;;  %v2857_v13 = vpop.f32.mrb[11].mxu0 }
 0x955   : > { %v2470_v14 = vadd.f32 %v2467_v12, %v2295_v2 }
 0x957   : > { %v2473_v16 = vsel %vm690_vm1, %v2470_v14, 0.0 }
 0x958   : > { %2474 = vadd.xlane.f32.xlu0 %v2473_v16 }
 0x9e5   : > { %v2475_v17 = vpop.xlane.xlu0 %2474 }
 0x9e6   : > { %v2476_v18 = vmul.f32 0.03125, %v2475_v17 }
 0x9e8   : > { %v2477_v19 = vsub.f32 %v2470_v14, %v2476_v18 }
 0x9ea   : > { %v2478_v20 = vmul.f32 %v2477_v19, %v2477_v19 }
 0x9ec   : > { %v2479_v21 = vsel %vm690_vm1, %v2478_v20, 0.0 }
 0x9ed   : > { %2480 = vadd.xlane.f32.xlu0 %v2479_v21 }
 0xa7a   : > { %v2481_v22 = vpop.xlane.xlu0 %2480 }
 0xa7b   : > { %v2482_v23 = vmul.f32 0.03125, %v2481_v22 }
 0xa7d   : > { %v2483_v24 = vadd.f32 1e-05, %v2482_v23 }
 0xa7f   : > { %3019 = vrsqrt.f32 %v2483_v24 }
 0xa89   : > { %v3020_v25 = vpop.eup %3019 }
 0xa8a   : > { %v2485_v26 = vmul.f32 %v3020_v25, %v2477_v19 }
 0xa8c   : > { %v2492_v28 = vmul.f32 %v2688_v41, %v2485_v26 }
 0xa8e   : > { %v2499_v29 = vadd.f32 %v2689_v27, %v2492_v28 }
 0xa90   : > { %2500 = vst.msk [vmem:[%s673_s27] sm:$0xff] %vm690_vm1, %v2499_v29 }
 0xa91   : > { %3150 = shalt.err (!%p3147_p7)
}
 0xa92   : > { %s3151_s15 = scalar_lea.hbm %s3853_s16, 128  ;;  %s3155_s8 = scalar_lea.hbm %s3982_s21, 256 }
 0xa93   : > { %p3152_p13 = scmp.ne.s32.totalorder %s3853_s16, %s3151_s15  ;;  %p3156_p2 = scmp.lt.u32.totalorder %s3853_s16, %s3982_s21 }
 0xa94   : > { %p3157_p12 = scmp.lt.u32.totalorder %s3155_s8, %s3151_s15  ;;  %p3159_p1 = scmp.lt.u32.totalorder %s3151_s15, %s3853_s16 }
 0xa95   : > { %p3153_p8 = pnand %p3152_p13, %p3983_p6 }
 0xa96   : > { %p3158_p0 = por %p3157_p12, %p3156_p2 }
 0xa97   : > { %p3154_p11 = pneg %p3153_p8 }
 0xa98   : > { %p3160_p10 = por %p3159_p1, %p3158_p0 }
 0xa9a   : > { %p3161_p3 = pnand %p3160_p10, %p3154_p11 }
 0xa9c   : > { %3164 = shalt.err (!%p3161_p3)
}
 0xa9d   : > { %2912 = dma.vmem_to_hbm [thread:$0]  (%p3983_p6), %s3855_s18, 128, %s3853_s16, %s2502_s23  }
 0xa9e PF: > { %s3984_s27 = sld [smem:[#allocation18_spill]]  ;;  %s3985_s2 = sld [smem:[#allocation22_spill]] }
 0xa9f   : > { %p3987_p9 = scmp.ge.s32.totalorder %s3231_s19, 2 }
 0xaa4   : > { %s2528_s30 = sand.u32 1, %s3984_s27   ;;  %p3986_p4 = scmp.ne.s32.totalorder %s3985_s2, 0 }
 0xaa5   : > { %s2529_s1 = scalar_lea.sflag [#allocation6], %s2528_s30 }
 0xaa6   : > { %p2929_p5 = pnand %p3987_p9, %p3986_p4 }
 0xaa8   : > { %3206 = dma.done.wait (!%p2929_p5), %s2529_s1, 128  }
 0xaa9   : > { %3208 = vsyncadd (!%p2929_p5), %s2529_s1, 4294967168  ;;  %s38_s19 = sadd.s32 1, %s3231_s19   ;;  %s3988_s25 = sld [smem:[#allocation19_spill]] }
 0xaaa   : > { %p35_p7 = scmp.ge.s32.totalorder %s38_s19, 4   ;;  %s3989_s29 = sld [smem:[#allocation25_spill]] }
 0xaab   : > { %s3990_s30 = sld [smem:[#allocation21_spill]]  ;;  %s3991_s0 = sld [smem:[#allocation23_spill]] }
 0xaac   : > { %s3992_s27 = smov %s3215_s28  ;;  %37 = sbr.rel (!%p35_p7) target bundleno = 21 (0x15), region = 162 }
 0xaaf   : > { %s3993_s28 = smov %s3988_s25 }
 0xab3   :  { %2534 = vsyncpa [#allocation5], 1 }
 0xab4   :  { %2536 = vsyncpa [#allocation5 + $0x1], 1 }
 0xab5   :  { %2537 = vsyncpa [#allocation8], 1 }
 0xab6   :  { %2539 = vsyncpa [#allocation8 + $0x1], 1 }
 0xab7   :  { %2540 = vsyncpa [#allocation11], 1 }
 0xab8   :  { %2541 = vsyncpa [#allocation6], 1 }
 0xab9   :  { %2543 = vsyncpa [#allocation6 + $0x1], 1 }

</bundles_post_ra>
